<compile_context>
chip_gen: v6e
topology: v6e:2x2x1
jax: 0.10.0
libtpu: 0.0.40
codegen_flags: <defaults>
</compile_context>

<pallas_src>
import math

import jax
import jax.numpy as jnp
from jax.experimental import pallas as pl
from jax.experimental.pallas import tpu as pltpu


# ---------------------------------------------------------------------------
# shared elementwise math (used identically by kernel and pure-JAX reference)
# ---------------------------------------------------------------------------
def _silu(x):
    return x * jax.nn.sigmoid(x)


def _softplus(x):
    return jnp.maximum(x, 0.0) + jnp.log1p(jnp.exp(-jnp.abs(x)))


# ---------------------------------------------------------------------------
# chunk-size selection: keep the (TL, d_state, d_inner) scratch pair small
# ---------------------------------------------------------------------------
def _pick_chunk(L, d_state, d_inner, target=256, scratch_budget=24 * 2 ** 20):
    per_row = 2 * d_state * d_inner * 4            # dA + dBx/h rows, f32
    cap = max(8, (scratch_budget // per_row) // 8 * 8)
    target = int(min(target, cap))
    if L <= target:
        return L
    t = (target // 8) * 8
    while t >= 8:
        if L % t == 0:
            return t
        t -= 8
    # TODO(synk): L not divisible by any multiple-of-8 chunk <= target; one big chunk.
    return L


# ---------------------------------------------------------------------------
# Pallas kernel (one (batch, chunk) grid point per invocation)
# ---------------------------------------------------------------------------
def make_block_kernel(TL, D, d_inner, d_state, dt_rank, d_conv, eps, has_residual):
    f32 = jnp.float32
    bf16 = jnp.bfloat16

    def kernel(*refs):
        idx = 0
        hid_ref = refs[idx]; idx += 1
        if has_residual:
            res_ref = refs[idx]; idx += 1
        (gamma_ref, beta_ref,
         w_in_x_ref, w_in_z_ref,
         w_conv_ref, b_conv_ref,
         w_xdt_ref, w_xb_ref, w_xc_ref,
         w_dt_ref, b_dt_ref,
         neg_a_ref, d_skip_ref, w_out_ref,
         out_ref, resout_ref,
         h_scr, tail_scr, xext_scr, dA_scr, hx_scr) = refs[idx:]

        ci = pl.program_id(1)

        # reset per-sequence carries at the first chunk of every batch element
        @pl.when(ci == 0)
        def _():
            h_scr[...] = jnp.zeros_like(h_scr)
            tail_scr[...] = jnp.zeros_like(tail_scr)

        # ---------------- Add + LayerNorm (the fusable part of Block) -------
        h = hid_ref[0]                                        # (TL, D) f32
        res_new = (res_ref[0] + h) if has_residual else h
        resout_ref[0] = res_new

        mu = jnp.mean(res_new, axis=-1, keepdims=True)
        xc = res_new - mu
        var = jnp.mean(xc * xc, axis=-1, keepdims=True)
        xn = xc * jax.lax.rsqrt(var + eps) * gamma_ref[...] + beta_ref[...]

        # ---------------- Mamba mixer ---------------------------------------
        # in_proj: bf16 MXU, f32 accumulation; weight pre-split (no lane slicing)
        xn16 = xn.astype(bf16)
        x = jnp.dot(xn16, w_in_x_ref[...], preferred_element_type=f32)   # (TL, d_inner)
        z = jnp.dot(xn16, w_in_z_ref[...], preferred_element_type=f32)   # (TL, d_inner)

        # causal depthwise conv1d with cross-chunk carry of the last d_conv-1 rows
        xext_scr[0:d_conv - 1, :] = tail_scr[...]             # prev-chunk tail / zeros
        xext_scr[d_conv - 1:, :] = x
        tail_scr[...] = xext_scr[TL:TL + d_conv - 1, :]       # carry for next chunk
        acc = jnp.zeros((TL, d_inner), f32) + b_conv_ref[...]
        for k in range(d_conv):                               # static unroll, d_conv small
            acc = acc + xext_scr[k:k + TL, :] * w_conv_ref[k:k + 1, :]
        x = _silu(acc)                                        # (TL, d_inner) f32

        # x_proj split into three lane-aligned projections; dt_proj + softplus
        x16 = x.astype(bf16)
        dt_lo = jnp.dot(x16, w_xdt_ref[...], preferred_element_type=f32)   # (TL, dt_rank)
        B_ = jnp.dot(x16, w_xb_ref[...], preferred_element_type=f32)       # (TL, d_state)
        C_ = jnp.dot(x16, w_xc_ref[...], preferred_element_type=f32)       # (TL, d_state)
        dt = _softplus(jnp.dot(dt_lo.astype(bf16), w_dt_ref[...],
                               preferred_element_type=f32) + b_dt_ref[...])  # (TL, d_inner)

        # per-chunk discretization (scratch stays O(TL * d_state * d_inner))
        a_neg = neg_a_ref[...]                                # (d_state, d_inner) = -exp(A_log)
        dA_scr[...] = jnp.exp(dt[:, None, :] * a_neg[None, :, :])      # (TL, ds, di)
        hx_scr[...] = (dt * x)[:, None, :] * B_[:, :, None]            # dB * x

        # sequential recurrence inside the chunk; overwrite hx_scr with the states
        def step(t, hstate):                                  # hstate: (d_state, d_inner)
            hnew = dA_scr[t] * hstate + hx_scr[t]
            hx_scr[pl.ds(t, 1), :, :] = hnew[None, :, :]
            return hnew

        h_last = jax.lax.fori_loop(0, TL, step, h_scr[...])
        h_scr[...] = h_last                                   # carry to next chunk

        # contract over d_state for the whole chunk at once (dense VPU + reduce)
        y = jnp.sum(C_[:, :, None] * hx_scr[...], axis=1)     # (TL, d_inner)

        # skip connection (D * x), gate with SiLU(z), out_proj (bf16 MXU, f32 acc)
        y = y + x * d_skip_ref[...]
        y = y * _silu(z)
        out_ref[0] = jnp.dot(y.astype(bf16), w_out_ref[...],
                             preferred_element_type=f32)      # (TL, D)

    return kernel


# ---------------------------------------------------------------------------
# wrapper
# ---------------------------------------------------------------------------
def block_forward(hidden, residual, p, *, d_state=16, d_conv=4, expand=2,
                  eps=1e-5, chunk=None):
    f32 = jnp.float32
    bf16 = jnp.bfloat16

    hidden = hidden.astype(f32)
    B, L, D = hidden.shape
    d_inner = expand * D
    dt_rank = math.ceil(D / 16)

    has_residual = residual is not None
    if has_residual:
        residual = residual.astype(f32)

    TL = int(chunk) if chunk is not None else _pick_chunk(L, d_state, d_inner)
    assert L % TL == 0, (L, TL)
    assert TL >= d_conv - 1
    n_chunks = L // TL

    # pre-split / pre-cast weights so every matmul output is lane-aligned and
    # weight DMA traffic is halved (bf16), accumulation stays f32 in-kernel.
    w_in_x = p["w_in"][:, :d_inner].astype(bf16)
    w_in_z = p["w_in"][:, d_inner:].astype(bf16)
    w_xdt = p["w_x"][:, :dt_rank].astype(bf16)
    w_xb = p["w_x"][:, dt_rank:dt_rank + d_state].astype(bf16)
    w_xc = p["w_x"][:, dt_rank + d_state:].astype(bf16)
    w_dt = p["w_dt"].astype(bf16)
    w_out = p["w_out"].astype(bf16)
    neg_a_t = (-jnp.exp(p["a_log_t"])).astype(f32)            # (d_state, d_inner)

    kernel = make_block_kernel(TL, D, d_inner, d_state, dt_rank, d_conv, eps,
                               has_residual)

    def act_spec():
        return pl.BlockSpec((1, TL, D), lambda b, c: (b, c, 0))

    def fixed(shape):
        nd = len(shape)
        return pl.BlockSpec(shape, lambda b, c, _n=nd: (0,) * _n)

    in_specs = [act_spec()]
    inputs = [hidden]
    if has_residual:
        in_specs.append(act_spec())
        inputs.append(residual)
    in_specs += [
        fixed((1, D)), fixed((1, D)),                        # LN gamma, beta
        fixed((D, d_inner)), fixed((D, d_inner)),            # in_proj x / z halves
        fixed((d_conv, d_inner)), fixed((1, d_inner)),       # conv weight, bias
        fixed((d_inner, dt_rank)),                           # x_proj -> dt_lo
        fixed((d_inner, d_state)), fixed((d_inner, d_state)),  # x_proj -> B, C
        fixed((dt_rank, d_inner)), fixed((1, d_inner)),      # dt_proj W^T, bias
        fixed((d_state, d_inner)),                           # -exp(A_log) (transposed)
        fixed((1, d_inner)),                                 # D skip
        fixed((d_inner, D)),                                 # out_proj W^T
    ]
    inputs += [p["gamma"], p["beta"], w_in_x, w_in_z, p["w_conv"], p["b_conv"],
               w_xdt, w_xb, w_xc, w_dt, p["b_dt"], neg_a_t, p["d"], w_out]

    out_specs = [act_spec(), act_spec()]
    out_shape = (jax.ShapeDtypeStruct((B, L, D), f32),
                 jax.ShapeDtypeStruct((B, L, D), f32))

    scratch = [
        pltpu.VMEM((d_state, d_inner), f32),                 # SSM state carry
        pltpu.VMEM((d_conv - 1, d_inner), f32),              # conv tail carry
        pltpu.VMEM((TL + d_conv - 1, d_inner), f32),         # padded conv input
        pltpu.VMEM((TL, d_state, d_inner), f32),             # exp(dt*A) per chunk
        pltpu.VMEM((TL, d_state, d_inner), f32),             # dt*x*B -> h states
    ]

    # explicit scoped-VMEM budget: double-buffered activation tiles + weights + scratch
    n_streams = (2 if has_residual else 1) + 2
    act_bytes = 2 * n_streams * TL * D * 4
    w_bytes = (2 * D * d_inner * 2 + 2 * D * 4
               + d_conv * d_inner * 4 + d_inner * 4
               + d_inner * dt_rank * 2 + 2 * d_inner * d_state * 2
               + dt_rank * d_inner * 2 + d_inner * 4
               + d_state * d_inner * 4 + d_inner * 4
               + d_inner * D * 2)
    scr_bytes = (d_state * d_inner + (d_conv - 1) * d_inner
                 + (TL + d_conv - 1) * d_inner
                 + 2 * TL * d_state * d_inner) * 4
    est = act_bytes + 2 * w_bytes + scr_bytes
    vmem_limit = int(min(64 * 2 ** 20, max(2 * est, 16 * 2 ** 20)))

    fn = pl.pallas_call(
        kernel,
        out_shape=out_shape,
        grid_spec=pltpu.PrefetchScalarGridSpec(
            num_scalar_prefetch=0,
            grid=(B, n_chunks),
            in_specs=in_specs,
            out_specs=out_specs,
            scratch_shapes=scratch),
        compiler_params=pltpu.CompilerParams(
            dimension_semantics=("parallel", "arbitrary"),
            vmem_limit_bytes=vmem_limit),
    )
    return fn(*inputs)


# ---------------------------------------------------------------------------
# pure-JAX reference (same math, f32, no Pallas) for a sanity check
# ---------------------------------------------------------------------------
def block_reference(hidden, residual, p, *, d_state=16, d_conv=4, expand=2, eps=1e-5):
    B, L, D = hidden.shape
    d_inner = expand * D
    dt_rank = math.ceil(D / 16)
    if residual is None:
        residual = jnp.zeros_like(hidden)
    res = residual + hidden
    mu = res.mean(-1, keepdims=True)
    var = ((res - mu) ** 2).mean(-1, keepdims=True)
    xn = (res - mu) / jnp.sqrt(var + eps) * p["gamma"][0] + p["beta"][0]

    xz = xn @ p["w_in"]
    x, z = xz[..., :d_inner], xz[..., d_inner:]
    x_pad = jnp.pad(x, ((0, 0), (d_conv - 1, 0), (0, 0)))
    acc = jnp.zeros_like(x) + p["b_conv"][0]
    for k in range(d_conv):
        acc = acc + x_pad[:, k:k + L, :] * p["w_conv"][k]
    x = _silu(acc)

    x_dbl = x @ p["w_x"]
    dt = _softplus(x_dbl[..., :dt_rank] @ p["w_dt"] + p["b_dt"][0])
    B_ = x_dbl[..., dt_rank:dt_rank + d_state]
    C_ = x_dbl[..., dt_rank + d_state:]
    A = -jnp.exp(p["a_log_t"].T)                              # (d_inner, d_state)

    def scan_fn(h, inp):
        dt_t, x_t, b_t, c_t = inp
        dA = jnp.exp(dt_t[:, None] * A)
        h = dA * h + (dt_t * x_t)[:, None] * b_t[None, :]
        y = (h * c_t[None, :]).sum(-1)
        return h, y

    def per_batch(xb, dtb, Bb, Cb):
        h0 = jnp.zeros((d_inner, d_state), jnp.float32)
        _, ys = jax.lax.scan(scan_fn, h0, (dtb, xb, Bb, Cb))
        return ys

    y = jax.vmap(per_batch)(x, dt, B_, C_)
    y = y + x * p["d"][0]
    y = y * _silu(z)
    out = y @ p["w_out"]
    return out, res


# ---------------------------------------------------------------------------
# deterministic parameter init + demo
# ---------------------------------------------------------------------------
def init_params(key, D, *, d_state=16, d_conv=4, expand=2):
    d_inner = expand * D
    dt_rank = math.ceil(D / 16)
    ks = jax.random.split(key, 8)
    f32 = jnp.float32
    params = {
        "gamma": jnp.ones((1, D), f32),
        "beta": jnp.zeros((1, D), f32),
        "w_in": 0.1 * jax.random.normal(ks[0], (D, 2 * d_inner), f32),
        "w_conv": 0.1 * jax.random.normal(ks[1], (d_conv, d_inner), f32),
        "b_conv": 0.01 * jax.random.normal(ks[2], (1, d_inner), f32),
        "w_x": 0.1 * jax.random.normal(ks[3], (d_inner, dt_rank + 2 * d_state), f32),
        "w_dt": 0.1 * jax.random.normal(ks[4], (dt_rank, d_inner), f32),
        "b_dt": jnp.full((1, d_inner), -4.0, f32)
                + 0.1 * jax.random.normal(ks[5], (1, d_inner), f32),
        # S4D-real init: A_log = log(1..d_state), stored transposed (d_state, d_inner)
        "a_log_t": jnp.log(jnp.tile(
            jnp.arange(1, d_state + 1, dtype=f32)[:, None], (1, d_inner))),
        "d": jnp.ones((1, d_inner), f32),
        "w_out": 0.1 * jax.random.normal(ks[6], (d_inner, D), f32),
    }
    return params


if __name__ == "__main__":
    key = jax.random.PRNGKey(0)
    k_h, k_r, k_p, k_h2, k_r2 = jax.random.split(key, 5)

    # --- main demo: B=2, L=8, D=32, residual provided -----------------------
    B, L, D = 2, 8, 32
    hidden = jax.random.normal(k_h, (B, L, D), jnp.float32)
    residual = jax.random.normal(k_r, (B, L, D), jnp.float32)
    params = init_params(k_p, D)

    out, res_out = block_forward(hidden, residual, params)
    out = jax.block_until_ready(out)
    res_out = jax.block_until_ready(res_out)

    ref_out, ref_res = block_reference(hidden, residual, params)
    err_h = float(jnp.max(jnp.abs(out - ref_out)))
    err_r = float(jnp.max(jnp.abs(res_out - ref_res)))
    assert out.shape == (B, L, D) and res_out.shape == (B, L, D)
    assert jnp.all(jnp.isfinite(out)) and jnp.all(jnp.isfinite(res_out))
    assert err_r < 1e-5, err_r
    assert err_h < 2e-2, err_h

    # --- chunked path: L=16 split into two chunks of 8 (state/conv carry) ---
    L2 = 16
    hidden2 = jax.random.normal(k_h2, (B, L2, D), jnp.float32)
    residual2 = jax.random.normal(k_r2, (B, L2, D), jnp.float32)
    out2, res2 = block_forward(hidden2, residual2, params, chunk=8)
    out2 = jax.block_until_ready(out2)
    ref_out2, ref_res2 = block_reference(hidden2, residual2, params)
    assert float(jnp.max(jnp.abs(res2 - ref_res2))) < 1e-5
    assert float(jnp.max(jnp.abs(out2 - ref_out2))) < 2e-2

    # --- residual=None (first block) path: no zeros tensor DMA --------------
    out0, res0 = block_forward(hidden, None, params)
    out0 = jax.block_until_ready(out0)
    ref_out0, ref_res0 = block_reference(hidden, None, params)
    assert float(jnp.max(jnp.abs(res0 - ref_res0))) < 1e-5
    assert float(jnp.max(jnp.abs(out0 - ref_out0))) < 2e-2

    print("KERNEL_OK")
</pallas_src>

<mosaic_0001>
module attributes {stable_mosaic.version = 11 : i64} {
  func.func @kernel(%arg0: i32, %arg1: i32, %arg2: memref<1x8x32xf32, #tpu.memory_space<vmem>>, %arg3: memref<1x8x32xf32, #tpu.memory_space<vmem>>, %arg4: memref<1x32xf32, #tpu.memory_space<vmem>>, %arg5: memref<1x32xf32, #tpu.memory_space<vmem>>, %arg6: memref<32x64xbf16, #tpu.memory_space<vmem>>, %arg7: memref<32x64xbf16, #tpu.memory_space<vmem>>, %arg8: memref<4x64xf32, #tpu.memory_space<vmem>>, %arg9: memref<1x64xf32, #tpu.memory_space<vmem>>, %arg10: memref<64x2xbf16, #tpu.memory_space<vmem>>, %arg11: memref<64x16xbf16, #tpu.memory_space<vmem>>, %arg12: memref<64x16xbf16, #tpu.memory_space<vmem>>, %arg13: memref<2x64xbf16, #tpu.memory_space<vmem>>, %arg14: memref<1x64xf32, #tpu.memory_space<vmem>>, %arg15: memref<16x64xf32, #tpu.memory_space<vmem>>, %arg16: memref<1x64xf32, #tpu.memory_space<vmem>>, %arg17: memref<64x32xbf16, #tpu.memory_space<vmem>>, %arg18: memref<1x8x32xf32, #tpu.memory_space<vmem>>, %arg19: memref<1x8x32xf32, #tpu.memory_space<vmem>>, %arg20: memref<16x64xf32, #tpu.memory_space<vmem>>, %arg21: memref<3x64xf32, #tpu.memory_space<vmem>>, %arg22: memref<11x64xf32, #tpu.memory_space<vmem>>, %arg23: memref<8x16x64xf32, #tpu.memory_space<vmem>>, %arg24: memref<8x16x64xf32, #tpu.memory_space<vmem>>) attributes {dimension_semantics = [#tpu.dimension_semantics<parallel>, #tpu.dimension_semantics<arbitrary>], iteration_bounds = array<i64: 2, 1>, scalar_prefetch = 0 : i64, scratch_operands = 5 : i64, tpu.core_type = #tpu.core_type<tc>, window_params = [{transform_indices = @transform_0, window_bounds = array<i64: 1, 8, 32>}, {transform_indices = @transform_1, window_bounds = array<i64: 1, 8, 32>}, {pipeline_mode = #tpu.pipeline_mode<synchronous>, transform_indices = @transform_2, window_bounds = array<i64: 1, 32>}, {pipeline_mode = #tpu.pipeline_mode<synchronous>, transform_indices = @transform_3, window_bounds = array<i64: 1, 32>}, {pipeline_mode = #tpu.pipeline_mode<synchronous>, transform_indices = @transform_4, window_bounds = array<i64: 32, 64>}, {pipeline_mode = #tpu.pipeline_mode<synchronous>, transform_indices = @transform_5, window_bounds = array<i64: 32, 64>}, {pipeline_mode = #tpu.pipeline_mode<synchronous>, transform_indices = @transform_6, window_bounds = array<i64: 4, 64>}, {pipeline_mode = #tpu.pipeline_mode<synchronous>, transform_indices = @transform_7, window_bounds = array<i64: 1, 64>}, {pipeline_mode = #tpu.pipeline_mode<synchronous>, transform_indices = @transform_8, window_bounds = array<i64: 64, 2>}, {pipeline_mode = #tpu.pipeline_mode<synchronous>, transform_indices = @transform_9, window_bounds = array<i64: 64, 16>}, {pipeline_mode = #tpu.pipeline_mode<synchronous>, transform_indices = @transform_10, window_bounds = array<i64: 64, 16>}, {pipeline_mode = #tpu.pipeline_mode<synchronous>, transform_indices = @transform_11, window_bounds = array<i64: 2, 64>}, {pipeline_mode = #tpu.pipeline_mode<synchronous>, transform_indices = @transform_12, window_bounds = array<i64: 1, 64>}, {pipeline_mode = #tpu.pipeline_mode<synchronous>, transform_indices = @transform_13, window_bounds = array<i64: 16, 64>}, {pipeline_mode = #tpu.pipeline_mode<synchronous>, transform_indices = @transform_14, window_bounds = array<i64: 1, 64>}, {pipeline_mode = #tpu.pipeline_mode<synchronous>, transform_indices = @transform_15, window_bounds = array<i64: 64, 32>}, {transform_indices = @transform_16, window_bounds = array<i64: 1, 8, 32>}, {transform_indices = @transform_17, window_bounds = array<i64: 1, 8, 32>}]} {
    %c0_i32 = arith.constant 0 : i32
    %0 = arith.cmpi eq, %arg1, %c0_i32 : i32
    %1 = arith.extui %0 : i1 to i32
    %c0_i32_0 = arith.constant 0 : i32
    %2 = arith.cmpi ne, %1, %c0_i32_0 : i32
    scf.if %2 {
      %cst_92 = arith.constant 0.000000e+00 : f32
      %135 = vector.broadcast %cst_92 : f32 to vector<16x64xf32>
      %c0_93 = arith.constant 0 : index
      %c0_94 = arith.constant 0 : index
      %136 = vector.load %arg20[%c0_93, %c0_94] : memref<16x64xf32, #tpu.memory_space<vmem>>, vector<16x64xf32>
      tpu.vector_store %arg20[%c0_93, %c0_94], %135 {strides = array<i32>} : memref<16x64xf32, #tpu.memory_space<vmem>>, vector<16x64xf32>,
      %cst_95 = arith.constant 0.000000e+00 : f32
      %137 = vector.broadcast %cst_95 : f32 to vector<3x64xf32>
      %c0_96 = arith.constant 0 : index
      %c0_97 = arith.constant 0 : index
      %138 = vector.load %arg21[%c0_96, %c0_97] : memref<3x64xf32, #tpu.memory_space<vmem>>, vector<3x64xf32>
      tpu.vector_store %arg21[%c0_96, %c0_97], %137 {strides = array<i32>} : memref<3x64xf32, #tpu.memory_space<vmem>>, vector<3x64xf32>,
    } else {
    }
    %c0 = arith.constant 0 : index
    %c0_1 = arith.constant 0 : index
    %c0_2 = arith.constant 0 : index
    %3 = vector.load %arg2[%c0, %c0_1, %c0_2] : memref<1x8x32xf32, #tpu.memory_space<vmem>>, vector<1x8x32xf32>
    %4 = vector.shape_cast %3 : vector<1x8x32xf32> to vector<8x32xf32>
    %c0_3 = arith.constant 0 : index
    %c0_4 = arith.constant 0 : index
    %c0_5 = arith.constant 0 : index
    %5 = vector.load %arg3[%c0_3, %c0_4, %c0_5] : memref<1x8x32xf32, #tpu.memory_space<vmem>>, vector<1x8x32xf32>
    %6 = vector.shape_cast %5 : vector<1x8x32xf32> to vector<8x32xf32>
    %7 = arith.addf %6, %4 : vector<8x32xf32>
    %c0_6 = arith.constant 0 : index
    %c0_7 = arith.constant 0 : index
    %c0_8 = arith.constant 0 : index
    %8 = vector.load %arg19[%c0_6, %c0_7, %c0_8] : memref<1x8x32xf32, #tpu.memory_space<vmem>>, vector<1x8x32xf32>
    %9 = vector.shape_cast %8 : vector<1x8x32xf32> to vector<8x32xf32>
    %10 = vector.shape_cast %7 : vector<8x32xf32> to vector<1x8x32xf32>
    tpu.vector_store %arg19[%c0_6, %c0_7, %c0_8], %10 {strides = array<i32>} : memref<1x8x32xf32, #tpu.memory_space<vmem>>, vector<1x8x32xf32>,
    %cst = arith.constant dense<0.000000e+00> : vector<8xf32>
    %11 = vector.multi_reduction <add>, %7, %cst [1] : vector<8x32xf32> to vector<8xf32>
    %12 = vector.shape_cast %11 : vector<8xf32> to vector<8x1xf32>
    %cst_9 = arith.constant 3.200000e+01 : f32
    %13 = vector.broadcast %cst_9 : f32 to vector<8x1xf32>
    %14 = arith.divf %12, %13 : vector<8x1xf32>
    %15 = vector.broadcast %14 : vector<8x1xf32> to vector<8x32xf32>
    %16 = arith.subf %7, %15 : vector<8x32xf32>
    %17 = arith.mulf %16, %16 : vector<8x32xf32>
    %cst_10 = arith.constant dense<0.000000e+00> : vector<8xf32>
    %18 = vector.multi_reduction <add>, %17, %cst_10 [1] : vector<8x32xf32> to vector<8xf32>
    %19 = vector.shape_cast %18 : vector<8xf32> to vector<8x1xf32>
    %cst_11 = arith.constant 3.200000e+01 : f32
    %20 = vector.broadcast %cst_11 : f32 to vector<8x1xf32>
    %21 = arith.divf %19, %20 : vector<8x1xf32>
    %cst_12 = arith.constant 9.99999974E-6 : f32
    %22 = vector.broadcast %cst_12 : f32 to vector<8x1xf32>
    %23 = arith.addf %21, %22 : vector<8x1xf32>
    %24 = math.rsqrt %23 : vector<8x1xf32>
    %25 = vector.broadcast %24 : vector<8x1xf32> to vector<8x32xf32>
    %26 = arith.mulf %16, %25 : vector<8x32xf32>
    %c0_13 = arith.constant 0 : index
    %c0_14 = arith.constant 0 : index
    %27 = vector.load %arg4[%c0_13, %c0_14] : memref<1x32xf32, #tpu.memory_space<vmem>>, vector<1x32xf32>
    %28 = vector.broadcast %27 : vector<1x32xf32> to vector<8x32xf32>
    %29 = arith.mulf %26, %28 : vector<8x32xf32>
    %c0_15 = arith.constant 0 : index
    %c0_16 = arith.constant 0 : index
    %30 = vector.load %arg5[%c0_15, %c0_16] : memref<1x32xf32, #tpu.memory_space<vmem>>, vector<1x32xf32>
    %31 = vector.broadcast %30 : vector<1x32xf32> to vector<8x32xf32>
    %32 = arith.addf %29, %31 : vector<8x32xf32>
    %33 = arith.truncf %32 : vector<8x32xf32> to vector<8x32xbf16>
    %c0_17 = arith.constant 0 : index
    %c0_18 = arith.constant 0 : index
    %34 = vector.load %arg6[%c0_17, %c0_18] : memref<32x64xbf16, #tpu.memory_space<vmem>>, vector<32x64xbf16>
    %cst_19 = arith.constant dense<0.000000e+00> : vector<8x64xf32>
    %35 = tpu.matmul %33, %34, %cst_19 {dimension_numbers = #tpu.dot_dimension_numbers<[1], [0], [0], [1], [0, 0, 1, 1], [], []>} : vector<8x32xbf16>, vector<32x64xbf16>, vector<8x64xf32> -> vector<8x64xf32>
    %c0_20 = arith.constant 0 : index
    %c0_21 = arith.constant 0 : index
    %36 = vector.load %arg7[%c0_20, %c0_21] : memref<32x64xbf16, #tpu.memory_space<vmem>>, vector<32x64xbf16>
    %cst_22 = arith.constant dense<0.000000e+00> : vector<8x64xf32>
    %37 = tpu.matmul %33, %36, %cst_22 {dimension_numbers = #tpu.dot_dimension_numbers<[1], [0], [0], [1], [0, 0, 1, 1], [], []>} : vector<8x32xbf16>, vector<32x64xbf16>, vector<8x64xf32> -> vector<8x64xf32>
    %c0_23 = arith.constant 0 : index
    %c0_24 = arith.constant 0 : index
    %38 = vector.load %arg21[%c0_23, %c0_24] : memref<3x64xf32, #tpu.memory_space<vmem>>, vector<3x64xf32>
    %c0_25 = arith.constant 0 : index
    %c0_26 = arith.constant 0 : index
    %39 = vector.load %arg22[%c0_25, %c0_26] : memref<11x64xf32, #tpu.memory_space<vmem>>, vector<3x64xf32>
    tpu.vector_store %arg22[%c0_25, %c0_26], %38 {strides = array<i32>} : memref<11x64xf32, #tpu.memory_space<vmem>>, vector<3x64xf32>,
    %c3 = arith.constant 3 : index
    %c0_27 = arith.constant 0 : index
    %40 = vector.load %arg22[%c3, %c0_27] : memref<11x64xf32, #tpu.memory_space<vmem>>, vector<8x64xf32>
    tpu.vector_store %arg22[%c3, %c0_27], %35 {strides = array<i32>} : memref<11x64xf32, #tpu.memory_space<vmem>>, vector<8x64xf32>,
    %c8 = arith.constant 8 : index
    %c0_28 = arith.constant 0 : index
    %41 = vector.load %arg22[%c8, %c0_28] : memref<11x64xf32, #tpu.memory_space<vmem>>, vector<3x64xf32>
    %c0_29 = arith.constant 0 : index
    %c0_30 = arith.constant 0 : index
    %42 = vector.load %arg21[%c0_29, %c0_30] : memref<3x64xf32, #tpu.memory_space<vmem>>, vector<3x64xf32>
    tpu.vector_store %arg21[%c0_29, %c0_30], %41 {strides = array<i32>} : memref<3x64xf32, #tpu.memory_space<vmem>>, vector<3x64xf32>,
    %cst_31 = arith.constant 0.000000e+00 : f32
    %43 = vector.broadcast %cst_31 : f32 to vector<8x64xf32>
    %c0_32 = arith.constant 0 : index
    %c0_33 = arith.constant 0 : index
    %44 = vector.load %arg9[%c0_32, %c0_33] : memref<1x64xf32, #tpu.memory_space<vmem>>, vector<1x64xf32>
    %45 = vector.broadcast %44 : vector<1x64xf32> to vector<8x64xf32>
    %46 = arith.addf %43, %45 : vector<8x64xf32>
    %c0_34 = arith.constant 0 : index
    %c0_35 = arith.constant 0 : index
    %47 = vector.load %arg22[%c0_34, %c0_35] : memref<11x64xf32, #tpu.memory_space<vmem>>, vector<8x64xf32>
    %c0_36 = arith.constant 0 : index
    %c0_37 = arith.constant 0 : index
    %48 = vector.load %arg8[%c0_36, %c0_37] : memref<4x64xf32, #tpu.memory_space<vmem>>, vector<1x64xf32>
    %49 = vector.broadcast %48 : vector<1x64xf32> to vector<8x64xf32>
    %50 = arith.mulf %47, %49 : vector<8x64xf32>
    %51 = arith.addf %46, %50 : vector<8x64xf32>
    %c1 = arith.constant 1 : index
    %c0_38 = arith.constant 0 : index
    %52 = vector.load %arg22[%c1, %c0_38] : memref<11x64xf32, #tpu.memory_space<vmem>>, vector<8x64xf32>
    %c1_39 = arith.constant 1 : index
    %c0_40 = arith.constant 0 : index
    %53 = vector.load %arg8[%c1_39, %c0_40] : memref<4x64xf32, #tpu.memory_space<vmem>>, vector<1x64xf32>
    %54 = vector.broadcast %53 : vector<1x64xf32> to vector<8x64xf32>
    %55 = arith.mulf %52, %54 : vector<8x64xf32>
    %56 = arith.addf %51, %55 : vector<8x64xf32>
    %c2 = arith.constant 2 : index
    %c0_41 = arith.constant 0 : index
    %57 = vector.load %arg22[%c2, %c0_41] : memref<11x64xf32, #tpu.memory_space<vmem>>, vector<8x64xf32>
    %c2_42 = arith.constant 2 : index
    %c0_43 = arith.constant 0 : index
    %58 = vector.load %arg8[%c2_42, %c0_43] : memref<4x64xf32, #tpu.memory_space<vmem>>, vector<1x64xf32>
    %59 = vector.broadcast %58 : vector<1x64xf32> to vector<8x64xf32>
    %60 = arith.mulf %57, %59 : vector<8x64xf32>
    %61 = arith.addf %56, %60 : vector<8x64xf32>
    %c3_44 = arith.constant 3 : index
    %c0_45 = arith.constant 0 : index
    %62 = vector.load %arg22[%c3_44, %c0_45] : memref<11x64xf32, #tpu.memory_space<vmem>>, vector<8x64xf32>
    %c3_46 = arith.constant 3 : index
    %c0_47 = arith.constant 0 : index
    %63 = vector.load %arg8[%c3_46, %c0_47] : memref<4x64xf32, #tpu.memory_space<vmem>>, vector<1x64xf32>
    %64 = vector.broadcast %63 : vector<1x64xf32> to vector<8x64xf32>
    %65 = arith.mulf %62, %64 : vector<8x64xf32>
    %66 = arith.addf %61, %65 : vector<8x64xf32>
    %67 = arith.negf %66 : vector<8x64xf32>
    %68 = math.exp %67 : vector<8x64xf32>
    %cst_48 = arith.constant 1.000000e+00 : f32
    %69 = vector.broadcast %cst_48 : f32 to vector<8x64xf32>
    %70 = arith.addf %69, %68 : vector<8x64xf32>
    %71 = arith.divf %69, %70 : vector<8x64xf32>
    %72 = arith.mulf %66, %71 : vector<8x64xf32>
    %73 = arith.truncf %72 : vector<8x64xf32> to vector<8x64xbf16>
    %c0_49 = arith.constant 0 : index
    %c0_50 = arith.constant 0 : index
    %74 = vector.load %arg10[%c0_49, %c0_50] : memref<64x2xbf16, #tpu.memory_space<vmem>>, vector<64x2xbf16>
    %cst_51 = arith.constant dense<0.000000e+00> : vector<8x2xf32>
    %75 = tpu.matmul %73, %74, %cst_51 {dimension_numbers = #tpu.dot_dimension_numbers<[1], [0], [0], [1], [0, 0, 1, 1], [], []>} : vector<8x64xbf16>, vector<64x2xbf16>, vector<8x2xf32> -> vector<8x2xf32>
    %c0_52 = arith.constant 0 : index
    %c0_53 = arith.constant 0 : index
    %76 = vector.load %arg11[%c0_52, %c0_53] : memref<64x16xbf16, #tpu.memory_space<vmem>>, vector<64x16xbf16>
    %cst_54 = arith.constant dense<0.000000e+00> : vector<8x16xf32>
    %77 = tpu.matmul %73, %76, %cst_54 {dimension_numbers = #tpu.dot_dimension_numbers<[1], [0], [0], [1], [0, 0, 1, 1], [], []>} : vector<8x64xbf16>, vector<64x16xbf16>, vector<8x16xf32> -> vector<8x16xf32>
    %c0_55 = arith.constant 0 : index
    %c0_56 = arith.constant 0 : index
    %78 = vector.load %arg12[%c0_55, %c0_56] : memref<64x16xbf16, #tpu.memory_space<vmem>>, vector<64x16xbf16>
    %cst_57 = arith.constant dense<0.000000e+00> : vector<8x16xf32>
    %79 = tpu.matmul %73, %78, %cst_57 {dimension_numbers = #tpu.dot_dimension_numbers<[1], [0], [0], [1], [0, 0, 1, 1], [], []>} : vector<8x64xbf16>, vector<64x16xbf16>, vector<8x16xf32> -> vector<8x16xf32>
    %80 = arith.truncf %75 : vector<8x2xf32> to vector<8x2xbf16>
    %c0_58 = arith.constant 0 : index
    %c0_59 = arith.constant 0 : index
    %81 = vector.load %arg13[%c0_58, %c0_59] : memref<2x64xbf16, #tpu.memory_space<vmem>>, vector<2x64xbf16>
    %cst_60 = arith.constant dense<0.000000e+00> : vector<8x64xf32>
    %82 = tpu.matmul %80, %81, %cst_60 {dimension_numbers = #tpu.dot_dimension_numbers<[1], [0], [0], [1], [0, 0, 1, 1], [], []>} : vector<8x2xbf16>, vector<2x64xbf16>, vector<8x64xf32> -> vector<8x64xf32>
    %c0_61 = arith.constant 0 : index
    %c0_62 = arith.constant 0 : index
    %83 = vector.load %arg14[%c0_61, %c0_62] : memref<1x64xf32, #tpu.memory_space<vmem>>, vector<1x64xf32>
    %84 = vector.broadcast %83 : vector<1x64xf32> to vector<8x64xf32>
    %85 = arith.addf %82, %84 : vector<8x64xf32>
    %cst_63 = arith.constant 0.000000e+00 : f32
    %86 = vector.broadcast %cst_63 : f32 to vector<8x64xf32>
    %87 = arith.maximumf %85, %86 : vector<8x64xf32>
    %88 = math.absf %85 : vector<8x64xf32>
    %cst_64 = arith.constant 0.000000e+00 : f32
    %89 = vector.broadcast %cst_64 : f32 to vector<8x64xf32>
    %90 = arith.subf %89, %88 : vector<8x64xf32>
    %91 = math.exp %90 : vector<8x64xf32>
    %92 = math.log1p %91 : vector<8x64xf32>
    %93 = arith.addf %87, %92 : vector<8x64xf32>
    %c0_65 = arith.constant 0 : index
    %c0_66 = arith.constant 0 : index
    %94 = vector.load %arg15[%c0_65, %c0_66] : memref<16x64xf32, #tpu.memory_space<vmem>>, vector<16x64xf32>
    %95 = vector.shape_cast %93 : vector<8x64xf32> to vector<8x1x64xf32>
    %96 = vector.shape_cast %94 : vector<16x64xf32> to vector<1x16x64xf32>
    %97 = vector.broadcast %95 : vector<8x1x64xf32> to vector<8x16x64xf32>
    %98 = vector.broadcast %96 : vector<1x16x64xf32> to vector<8x16x64xf32>
    %99 = arith.mulf %97, %98 : vector<8x16x64xf32>
    %100 = math.exp %99 : vector<8x16x64xf32>
    %c0_67 = arith.constant 0 : index
    %c0_68 = arith.constant 0 : index
    %c0_69 = arith.constant 0 : index
    %101 = vector.load %arg23[%c0_67, %c0_68, %c0_69] : memref<8x16x64xf32, #tpu.memory_space<vmem>>, vector<8x16x64xf32>
    tpu.vector_store %arg23[%c0_67, %c0_68, %c0_69], %100 {strides = array<i32>} : memref<8x16x64xf32, #tpu.memory_space<vmem>>, vector<8x16x64xf32>,
    %102 = arith.mulf %93, %72 : vector<8x64xf32>
    %103 = vector.shape_cast %102 : vector<8x64xf32> to vector<8x1x64xf32>
    %104 = vector.shape_cast %77 : vector<8x16xf32> to vector<8x16x1xf32>
    %105 = vector.broadcast %103 : vector<8x1x64xf32> to vector<8x16x64xf32>
    %106 = vector.broadcast %104 : vector<8x16x1xf32> to vector<8x16x64xf32>
    %107 = arith.mulf %105, %106 : vector<8x16x64xf32>
    %c0_70 = arith.constant 0 : index
    %c0_71 = arith.constant 0 : index
    %c0_72 = arith.constant 0 : index
    %108 = vector.load %arg24[%c0_70, %c0_71, %c0_72] : memref<8x16x64xf32, #tpu.memory_space<vmem>>, vector<8x16x64xf32>
    tpu.vector_store %arg24[%c0_70, %c0_71, %c0_72], %107 {strides = array<i32>} : memref<8x16x64xf32, #tpu.memory_space<vmem>>, vector<8x16x64xf32>,
    %c0_73 = arith.constant 0 : index
    %c0_74 = arith.constant 0 : index
    %109 = vector.load %arg20[%c0_73, %c0_74] : memref<16x64xf32, #tpu.memory_space<vmem>>, vector<16x64xf32>
    %c0_i32_75 = arith.constant 0 : i32
    %c8_i32 = arith.constant 8 : i32
    %110 = arith.addi %c0_i32_75, %c8_i32 : i32
    %c1_i32 = arith.constant 1 : i32
    %111 = scf.for %arg25 = %c0_i32_75 to %110 step %c1_i32 iter_args(%arg26 = %109) -> (vector<16x64xf32>)  : i32 {
      %135 = arith.index_cast %arg25 : i32 to index
      %c0_92 = arith.constant 0 : index
      %c0_93 = arith.constant 0 : index
      %136 = vector.load %arg23[%135, %c0_92, %c0_93] : memref<8x16x64xf32, #tpu.memory_space<vmem>>, vector<1x16x64xf32>
      %137 = vector.shape_cast %136 : vector<1x16x64xf32> to vector<16x64xf32>
      %138 = arith.mulf %137, %arg26 : vector<16x64xf32>
      %139 = arith.index_cast %arg25 : i32 to index
      %c0_94 = arith.constant 0 : index
      %c0_95 = arith.constant 0 : index
      %140 = vector.load %arg24[%139, %c0_94, %c0_95] : memref<8x16x64xf32, #tpu.memory_space<vmem>>, vector<1x16x64xf32>
      %141 = vector.shape_cast %140 : vector<1x16x64xf32> to vector<16x64xf32>
      %142 = arith.addf %138, %141 : vector<16x64xf32>
      %143 = vector.shape_cast %142 : vector<16x64xf32> to vector<1x16x64xf32>
      %144 = arith.index_cast %arg25 : i32 to index
      %c0_96 = arith.constant 0 : index
      %c0_97 = arith.constant 0 : index
      %145 = vector.load %arg24[%144, %c0_96, %c0_97] : memref<8x16x64xf32, #tpu.memory_space<vmem>>, vector<1x16x64xf32>
      tpu.vector_store %arg24[%144, %c0_96, %c0_97], %143 {strides = array<i32>} : memref<8x16x64xf32, #tpu.memory_space<vmem>>, vector<1x16x64xf32>,
      scf.yield %142 : vector<16x64xf32>
    }
    %c8_i32_76 = arith.constant 8 : i32
    %c0_77 = arith.constant 0 : index
    %c0_78 = arith.constant 0 : index
    %112 = vector.load %arg20[%c0_77, %c0_78] : memref<16x64xf32, #tpu.memory_space<vmem>>, vector<16x64xf32>
    tpu.vector_store %arg20[%c0_77, %c0_78], %111 {strides = array<i32>} : memref<16x64xf32, #tpu.memory_space<vmem>>, vector<16x64xf32>,
    %113 = vector.shape_cast %79 : vector<8x16xf32> to vector<8x16x1xf32>
    %c0_79 = arith.constant 0 : index
    %c0_80 = arith.constant 0 : index
    %c0_81 = arith.constant 0 : index
    %114 = vector.load %arg24[%c0_79, %c0_80, %c0_81] : memref<8x16x64xf32, #tpu.memory_space<vmem>>, vector<8x16x64xf32>
    %115 = vector.broadcast %113 : vector<8x16x1xf32> to vector<8x16x64xf32>
    %116 = arith.mulf %115, %114 : vector<8x16x64xf32>
    %cst_82 = arith.constant dense<0.000000e+00> : vector<8x64xf32>
    %117 = vector.multi_reduction <add>, %116, %cst_82 [1] : vector<8x16x64xf32> to vector<8x64xf32>
    %c0_83 = arith.constant 0 : index
    %c0_84 = arith.constant 0 : index
    %118 = vector.load %arg16[%c0_83, %c0_84] : memref<1x64xf32, #tpu.memory_space<vmem>>, vector<1x64xf32>
    %119 = vector.broadcast %118 : vector<1x64xf32> to vector<8x64xf32>
    %120 = arith.mulf %72, %119 : vector<8x64xf32>
    %121 = arith.addf %117, %120 : vector<8x64xf32>
    %122 = arith.negf %37 : vector<8x64xf32>
    %123 = math.exp %122 : vector<8x64xf32>
    %cst_85 = arith.constant 1.000000e+00 : f32
    %124 = vector.broadcast %cst_85 : f32 to vector<8x64xf32>
    %125 = arith.addf %124, %123 : vector<8x64xf32>
    %126 = arith.divf %124, %125 : vector<8x64xf32>
    %127 = arith.mulf %37, %126 : vector<8x64xf32>
    %128 = arith.mulf %121, %127 : vector<8x64xf32>
    %129 = arith.truncf %128 : vector<8x64xf32> to vector<8x64xbf16>
    %c0_86 = arith.constant 0 : index
    %c0_87 = arith.constant 0 : index
    %130 = vector.load %arg17[%c0_86, %c0_87] : memref<64x32xbf16, #tpu.memory_space<vmem>>, vector<64x32xbf16>
    %cst_88 = arith.constant dense<0.000000e+00> : vector<8x32xf32>
    %131 = tpu.matmul %129, %130, %cst_88 {dimension_numbers = #tpu.dot_dimension_numbers<[1], [0], [0], [1], [0, 0, 1, 1], [], []>} : vector<8x64xbf16>, vector<64x32xbf16>, vector<8x32xf32> -> vector<8x32xf32>
    %c0_89 = arith.constant 0 : index
    %c0_90 = arith.constant 0 : index
    %c0_91 = arith.constant 0 : index
    %132 = vector.load %arg18[%c0_89, %c0_90, %c0_91] : memref<1x8x32xf32, #tpu.memory_space<vmem>>, vector<1x8x32xf32>
    %133 = vector.shape_cast %132 : vector<1x8x32xf32> to vector<8x32xf32>
    %134 = vector.shape_cast %131 : vector<8x32xf32> to vector<1x8x32xf32>
    tpu.vector_store %arg18[%c0_89, %c0_90, %c0_91], %134 {strides = array<i32>} : memref<1x8x32xf32, #tpu.memory_space<vmem>>, vector<1x8x32xf32>,
    return
  }
  func.func @transform_0(%arg0: i32, %arg1: i32) -> (i32, i32, i32) {
    %c0_i32 = arith.constant 0 : i32
    %c0_i32_0 = arith.constant 0 : i32
    return %arg0, %arg1, %c0_i32 : i32, i32, i32
  }
  func.func @transform_1(%arg0: i32, %arg1: i32) -> (i32, i32, i32) {
    %c0_i32 = arith.constant 0 : i32
    %c0_i32_0 = arith.constant 0 : i32
    return %arg0, %arg1, %c0_i32 : i32, i32, i32
  }
  func.func @transform_2(%arg0: i32, %arg1: i32) -> (i32, i32) {
    %c0_i32 = arith.constant 0 : i32
    %c0_i32_0 = arith.constant 0 : i32
    %c0_i32_1 = arith.constant 0 : i32
    return %c0_i32, %c0_i32_0 : i32, i32
  }
  func.func @transform_3(%arg0: i32, %arg1: i32) -> (i32, i32) {
    %c0_i32 = arith.constant 0 : i32
    %c0_i32_0 = arith.constant 0 : i32
    %c0_i32_1 = arith.constant 0 : i32
    return %c0_i32, %c0_i32_0 : i32, i32
  }
  func.func @transform_4(%arg0: i32, %arg1: i32) -> (i32, i32) {
    %c0_i32 = arith.constant 0 : i32
    %c0_i32_0 = arith.constant 0 : i32
    %c0_i32_1 = arith.constant 0 : i32
    return %c0_i32, %c0_i32_0 : i32, i32
  }
  func.func @transform_5(%arg0: i32, %arg1: i32) -> (i32, i32) {
    %c0_i32 = arith.constant 0 : i32
    %c0_i32_0 = arith.constant 0 : i32
    %c0_i32_1 = arith.constant 0 : i32
    return %c0_i32, %c0_i32_0 : i32, i32
  }
  func.func @transform_6(%arg0: i32, %arg1: i32) -> (i32, i32) {
    %c0_i32 = arith.constant 0 : i32
    %c0_i32_0 = arith.constant 0 : i32
    %c0_i32_1 = arith.constant 0 : i32
    return %c0_i32, %c0_i32_0 : i32, i32
  }
  func.func @transform_7(%arg0: i32, %arg1: i32) -> (i32, i32) {
    %c0_i32 = arith.constant 0 : i32
    %c0_i32_0 = arith.constant 0 : i32
    %c0_i32_1 = arith.constant 0 : i32
    return %c0_i32, %c0_i32_0 : i32, i32
  }
  func.func @transform_8(%arg0: i32, %arg1: i32) -> (i32, i32) {
    %c0_i32 = arith.constant 0 : i32
    %c0_i32_0 = arith.constant 0 : i32
    %c0_i32_1 = arith.constant 0 : i32
    return %c0_i32, %c0_i32_0 : i32, i32
  }
  func.func @transform_9(%arg0: i32, %arg1: i32) -> (i32, i32) {
    %c0_i32 = arith.constant 0 : i32
    %c0_i32_0 = arith.constant 0 : i32
    %c0_i32_1 = arith.constant 0 : i32
    return %c0_i32, %c0_i32_0 : i32, i32
  }
  func.func @transform_10(%arg0: i32, %arg1: i32) -> (i32, i32) {
    %c0_i32 = arith.constant 0 : i32
    %c0_i32_0 = arith.constant 0 : i32
    %c0_i32_1 = arith.constant 0 : i32
    return %c0_i32, %c0_i32_0 : i32, i32
  }
  func.func @transform_11(%arg0: i32, %arg1: i32) -> (i32, i32) {
    %c0_i32 = arith.constant 0 : i32
    %c0_i32_0 = arith.constant 0 : i32
    %c0_i32_1 = arith.constant 0 : i32
    return %c0_i32, %c0_i32_0 : i32, i32
  }
  func.func @transform_12(%arg0: i32, %arg1: i32) -> (i32, i32) {
    %c0_i32 = arith.constant 0 : i32
    %c0_i32_0 = arith.constant 0 : i32
    %c0_i32_1 = arith.constant 0 : i32
    return %c0_i32, %c0_i32_0 : i32, i32
  }
  func.func @transform_13(%arg0: i32, %arg1: i32) -> (i32, i32) {
    %c0_i32 = arith.constant 0 : i32
    %c0_i32_0 = arith.constant 0 : i32
    %c0_i32_1 = arith.constant 0 : i32
    return %c0_i32, %c0_i32_0 : i32, i32
  }
  func.func @transform_14(%arg0: i32, %arg1: i32) -> (i32, i32) {
    %c0_i32 = arith.constant 0 : i32
    %c0_i32_0 = arith.constant 0 : i32
    %c0_i32_1 = arith.constant 0 : i32
    return %c0_i32, %c0_i32_0 : i32, i32
  }
  func.func @transform_15(%arg0: i32, %arg1: i32) -> (i32, i32) {
    %c0_i32 = arith.constant 0 : i32
    %c0_i32_0 = arith.constant 0 : i32
    %c0_i32_1 = arith.constant 0 : i32
    return %c0_i32, %c0_i32_0 : i32, i32
  }
  func.func @transform_16(%arg0: i32, %arg1: i32) -> (i32, i32, i32) {
    %c0_i32 = arith.constant 0 : i32
    %c0_i32_0 = arith.constant 0 : i32
    return %arg0, %arg1, %c0_i32 : i32, i32, i32
  }
  func.func @transform_17(%arg0: i32, %arg1: i32) -> (i32, i32, i32) {
    %c0_i32 = arith.constant 0 : i32
    %c0_i32_0 = arith.constant 0 : i32
    return %arg0, %arg1, %c0_i32 : i32, i32, i32
  }
}

</mosaic_0001>

<bundles_post_ra>
// kernel: tpu_custom_call.1
= control target key start
LH: loop header
LB: loop body
LE: loop exit
PB: predicated region body
PF: predicated region fallthrough
CT: control target
= control target key end

     0   :  { %s3092_s0 = inlined_call_operand.vmem [shape: f32[2,8,32], index: 0, kind: input, shape index: {}]   ;;  %s3093_s1 = inlined_call_operand.vmem [shape: f32[2,8,32], index: 1, kind: input, shape index: {}]   ;;  %s3094_s2 = inlined_call_operand.vmem [shape: f32[1,32], index: 2, kind: input, shape index: {}]   ;;  %s3095_s3 = inlined_call_operand.vmem [shape: f32[1,32], index: 3, kind: input, shape index: {}]   ;;  %s3096_s4 = inlined_call_operand.vmem [shape: bf16[32,64], index: 4, kind: input, shape index: {}]   ;;  %s3097_s5 = inlined_call_operand.vmem [shape: bf16[32,64], index: 5, kind: input, shape index: {}]   ;;  %s3098_s6 = inlined_call_operand.vmem [shape: f32[4,64], index: 6, kind: input, shape index: {}]   ;;  %s3099_s7 = inlined_call_operand.vmem [shape: f32[1,64], index: 7, kind: input, shape index: {}]   ;;  %s3100_s8 = inlined_call_operand.vmem [shape: bf16[64,2], index: 8, kind: input, shape index: {}]   ;;  %s3101_s9 = inlined_call_operand.vmem [shape: bf16[64,16], index: 9, kind: input, shape index: {}]   ;;  %s3102_s10 = inlined_call_operand.vmem [shape: bf16[64,16], index: 10, kind: input, shape index: {}]   ;;  %s3103_s11 = inlined_call_operand.vmem [shape: bf16[2,64], index: 11, kind: input, shape index: {}]   ;;  %s3104_s12 = inlined_call_operand.vmem [shape: f32[1,64], index: 12, kind: input, shape index: {}]   ;;  %s3105_s13 = inlined_call_operand.vmem [shape: f32[16,64], index: 13, kind: input, shape index: {}]   ;;  %s3106_s14 = inlined_call_operand.vmem [shape: f32[1,64], index: 14, kind: input, shape index: {}]   ;;  %s3107_s15 = inlined_call_operand.vmem [shape: bf16[64,32], index: 15, kind: input, shape index: {}]   ;;  %s3108_s16 = inlined_call_operand.hbm [shape: f32[2,8,32], index: 16, kind: output, shape index: {0}]   ;;  %s3109_s17 = inlined_call_operand.hbm [shape: f32[2,8,32], index: 17, kind: output, shape index: {1}]  }
   0x1   :  { %3119 = sst [smem:[#allocation21_spill]] %s3092_s0 }
   0x2   :  { %3120 = sst [smem:[#allocation22_spill]] %s3093_s1 }
   0x3   :  { %3121 = sst [smem:[#allocation23_spill]] %s3094_s2 }
   0x4   :  { %3122 = sst [smem:[#allocation24_spill]] %s3095_s3 }
   0x5   :  { %23 = vsyncpa [#allocation8], 0 }
   0x6   :  { %25 = vsyncpa [#allocation8 + $0x1], 0 }
   0x7   :  { %26 = vsyncpa [#allocation10], 0 }
   0x8   :  { %28 = vsyncpa [#allocation10 + $0x1], 0  ;;  %s2586_s24 = smov 0   ;;  %s2588_s25 = smov 0  }
   0x9   :  { %s2590_s26 = smov 0   ;;  %s2592_s27 = smov 0  }
   0xa   :  { %s2594_s28 = smov 0   ;;  %s2596_s29 = smov 0  }
   0xb LB: > { %3123 = sst [smem:[#allocation13_spill]] %s2457_s24  ;;  %s2054_s0 = sadd.s32 4294967295, %s2477_s29   ;;  %s2477_s29 = sphi %s2596_s29, %s34_s29   ;;  %s2473_s28 = sphi %s2594_s28, %s3145_s28   ;;  %s2469_s27 = sphi %s2592_s27, %s3144_s27   ;;  %s2465_s26 = sphi %s2590_s26, %s3143_s26   ;;  %s2461_s25 = sphi %s2588_s25, %s3142_s25   ;;  %s2457_s24 = sphi %s2586_s24, %s3141_s24  }
   0xc   : > { %3124 = sst [smem:[#allocation14_spill]] %s2461_s25  ;;  %s2055_s30 = sadd.s32 4294967294, %s2477_s29  }
   0xd   : > { %3125 = sst [smem:[#allocation15_spill]] %s2465_s26  ;;  %s46_s18 = sadd.s32 1, %s2473_s28 }
   0xe   : > { %3126 = sst [smem:[#allocation16_spill]] %s2473_s28  ;;  %s405_s19 = sadd.s32 1, %s2465_s26 }
   0xf   : > { %3127 = sst [smem:[#allocation17_spill]] %s2477_s29  ;;  %p48_p0 = scmp.ge.s32.totalorder %s46_s18, 2 }
  0x10   : > { %p415_p1 = scmp.ne.s32.totalorder %s2465_s26, %s2461_s25  ;;  %p416_p2 = scmp.eq.s32.totalorder %s2054_s0, 1 }
  0x11   : > { %p421_p3 = scmp.ne.s32.totalorder %s2461_s25, %s2457_s24  ;;  %s3147_s18 = smov (%p48_p0, %s46_s18), 0 }
  0x12   : > { %3128 = sst [smem:[#allocation18_spill]] %s3147_s18  ;;  %p2626_p4 = por %p416_p2, %p415_p1 }
  0x13   : > { %p422_p5 = scmp.eq.s32.totalorder %s2055_s30, 1  ;;  %s400_s20 = ssub.s32 %s2473_s28, %s3147_s18 }
  0x14   : > { %p2058_p6 = scmp.ge.s32.totalorder %s2477_s29, 1  ;;  %p403_p7 = scmp.eq.s32.totalorder %s400_s20, 0 }
  0x15   : > { %p2633_p8 = por %p422_p5, %p421_p3  ;;  %p530_p9 = scmp.lt.s32.totalorder %s2477_s29, 3 }
  0x16   : > { %s2639_s22 = scalar_select %p403_p7, %s2465_s26, %s405_s19  }
  0x17   : > { %s3130_s21 = scalar_select %p2633_p8, 1, 0 }
  0x18   : > { %3132 = sst [smem:[#allocation20_spill]] %s2639_s22  ;;  %p531_p10 = pnand %p2058_p6, %p530_p9 }
  0x19   : > { %3131 = sst [smem:[#allocation19_spill]] %s3130_s21  ;;  %p596_p11 = scmp.lt.s32.totalorder (!%p531_p10), %s2469_s27, 1 }
  0x1a   : > { %534 = sbr.rel (%p531_p10) target bundleno = 1459 (0x5b3), region = 84  ;;  %s2643_s23 = sand.u32 (!%p531_p10), 1, %s2461_s25  }
  0x1b   : > { %s2059_s0 = sshll.u32 (!%p531_p10), %s2643_s23, 3  ;;  %s3133_s24 = sld [smem:[#allocation21_spill]] (!%p531_p10) }
  0x1c   : > { %s3134_s22 = sld [smem:[#allocation22_spill]] (!%p531_p10)  ;;  %s2656_s25 = scalar_lea.vmem (!%p531_p10), [#allocation9], %s2059_s0 }
  0x1d   : > { %s3135_s2 = sld [smem:[#allocation23_spill]] (!%p531_p10)  ;;  %s2925_s18 = scalar_lea.vmem (!%p531_p10), [#allocation7], %s2059_s0 }
  0x1e   : > { %s3136_s3 = sld [smem:[#allocation24_spill]] (!%p531_p10) }
  0x1f   : > { %s597_s30 = scalar_select %p596_p11, %s2469_s27, 1  ;;  %vm623_vm0 = vcmask 261120   ;;  %vm615_vm1 = vcmask 523264   ;;  %v2293_v9 = vld [vmem:[%s3096_s4 + $0x8] sm:$0xff]   ;;  %v2491_v11 = vmov 0.0   ;;  %v2295_v12 = vld [vmem:[%s3096_s4] sm:$0xff]  }
  0x20   : > { %v2294_v10 = vld [vmem:[%s3097_s5 + $0x8] sm:$0xff]   ;;  %616 = vst.msk [vmem:[#allocation2] sm:$0xff] %vm615_vm1, %v2491_v11  ;;  %617 = vst.msk [vmem:[#allocation2 + $0x8] sm:$0xff] %vm615_vm1, %v2491_v11  ;;  %2136 = vmatprep.subr.bf16.mxu0 %v2491_v11  ;;  %2144 = vmatprep.subr.bf16.mxu1 %v2491_v11  ;;  %v2296_v13 = vld [vmem:[%s3097_s5] sm:$0xff]   ;;  %vm2492_vm2 = vmmov 0   ;;  %vm618_vm3 = vcmask 518144  }
  0x21   : > { %s2061_s20 = sshll.u32 %s597_s30, 3  ;;  %2137 = vmatpush3.bf16.msra.mxu0 %v2293_v9  ;;  %2145 = vmatpush3.bf16.msra.mxu1 %v2294_v10  ;;  %619 = vst.msk [vmem:[#allocation3] sm:$0x7] %vm618_vm3, %v2491_v11  ;;  %v2297_v27 = vld [vmem:[%s3100_s8 + $0x18] sm:$0xff]   ;;  %v2299_v29 = vld [vmem:[%s3100_s8 + $0x10] sm:$0xff]   ;;  %v2301_v31 = vld [vmem:[%s3100_s8 + $0x8] sm:$0xff]   ;;  %v1124_v9 = vlaneseq }
  0x22   : > { %s602_s21 = scalar_lea.vmem %s3133_s24, %s2061_s20  ;;  %s609_s26 = scalar_lea.vmem %s3134_s22, %s2061_s20  ;;  %2138 = vmatprep.subr.bf16.mxu0 %v2491_v11  ;;  %2146 = vmatprep.subr.bf16.mxu1 %v2491_v11  ;;  %v2298_v28 = vld [vmem:[%s3101_s9 + $0x18] sm:$0xff]   ;;  %v2300_v30 = vld [vmem:[%s3101_s9 + $0x10] sm:$0xff]   ;;  %v2302_v32 = vld [vmem:[%s3101_s9 + $0x8] sm:$0xff]   ;;  %vm1058_vm4 = vcmask 1040384   ;;  %vm1054_vm5 = vcmask 15360  }
  0x23   : > { %v620_v0 = vld [vmem:[%s602_s21] sm:$0xff]  ;;  %2140 = vmatprep.mubr.msk.bf16.mxu0 %vm2492_vm2, %v2491_v11  ;;  %2148 = vmatprep.mubr.msk.bf16.mxu1 %vm2492_vm2, %v2491_v11  ;;  %v2786_v10 = vshrl.u32 %v1124_v9, 7  ;;  %s2487_s21 = smov 0  }
  0x24   : > { %v621_v1 = vld [vmem:[%s609_s26] sm:$0xff] }
  0x25   : > { %v622_v2 = vadd.f32 %v621_v1, %v620_v0  ;;  %2139 = vmatpush3.bf16.msra.mxu0 %v2295_v12  ;;  %2147 = vmatpush3.bf16.msra.mxu1 %v2296_v13  ;;  %v2063_v20 = vld [vmem:[%s3135_s2] ss:$0 sm:$0xff]  ;;  %v2073_v45 = vld [vmem:[%s3098_s6 + $0x1] ss:$0 sm:$0xff]  ;;  %v2074_v51 = vld [vmem:[%s3098_s6 + $0x2] ss:$0 sm:$0xff] }
  0x26   : > { %2152 = vmatprep.subr.bf16.mxu0 %v2491_v11  ;;  %2164 = vmatprep.subr.bf16.mxu1 %v2491_v11  ;;  %v2064_v22 = vld [vmem:[%s3136_s3] ss:$0 sm:$0xff]  ;;  %v2075_v55 = vld [vmem:[%s3098_s6 + $0x3] ss:$0 sm:$0xff]  ;;  %v2789_v12 = vsub.s32 0, %v2786_v10  ;;  %v1337_v13 = vsub.s32 1, %v2786_v10 }
  0x27   : > { %v625_v3 = vsel %vm623_vm0, %v622_v2, 0.0  ;;  %624 = vst.msk [vmem:[%s2656_s25] sm:$0xff] %vm623_vm0, %v622_v2  ;;  %v2687_v14 = vld [vmem:[#allocation2] sm:$0xff]   ;;  %v2689_v15 = vld [vmem:[#allocation2 + $0x8] sm:$0xff]  }
  0x28   : > { %626 = vadd.xlane.f32.xlu0 %v625_v3  ;;  %v771_v26 = vld [vmem:[#allocation3] sm:$0x7]  ;;  %v2303_v33 = vld [vmem:[%s3100_s8] sm:$0xff]   ;;  %v2305_v3 = vld [vmem:[%s3102_s10 + $0x18] sm:$0xff]  }
  0x29   : > { %773 = vst.msk [vmem:[#allocation4] sm:$0x7] %vm618_vm3, %v771_v26  ;;  %v2304_v34 = vld [vmem:[%s3101_s9] sm:$0xff]  }
  0x2a   : > { %v2072_v43 = vld [vmem:[%s3098_s6] ss:$0 sm:$0xff] }
  0x2b   : > { %v2071_v44 = vld [vmem:[%s3099_s7] ss:$0 sm:$0xff] }
  0xb1   : > { %v627_v4 = vpop.xlane.xlu0 %626 }
  0xb2   : > { %v629_v5 = vmul.f32 0.03125, %v627_v4 }
  0xb4   : > { %v630_v6 = vsub.f32 %v622_v2, %v629_v5  ;;  %v1046_v2 = vld [vmem:[%s3103_s11] sm:$0x1] }
  0xb5   : > { %v1060_v5 = vsel %vm1058_vm4, %v1046_v2, 0 }
  0xb6   : > { %v631_v7 = vmul.f32 %v630_v6, %v630_v6 }
  0xb8   : > { %v632_v8 = vsel %vm623_vm0, %v631_v7, 0.0  ;;  %v2307_v7 = vld [vmem:[%s3102_s10 + $0x8] sm:$0xff]  }
  0xb9   : > { %633 = vadd.xlane.f32.xlu0 %v632_v8  ;;  %v2308_v8 = vld [vmem:[%s3102_s10] sm:$0xff]  }
 0x142   : > { %v634_v16 = vpop.xlane.xlu0 %633 }
 0x143   : > { %v635_v17 = vmul.f32 0.03125, %v634_v16 }
 0x145   : > { %v636_v18 = vadd.f32 1e-05, %v635_v17 }
 0x147   : > { %2309 = vrsqrt.f32 %v636_v18  ;;  %v1370_v18 = vsub.s32 4, %v2786_v10 }
 0x154   : > { %v2310_v19 = vpop.eup %2309 }
 0x155   : > { %v638_v21 = vmul.f32 %v2310_v19, %v630_v6  ;;  %v2306_v6 = vld [vmem:[%s3102_s10 + $0x10] sm:$0xff]  }
 0x157   : > { %v646_v23 = vmul.f32 %v2063_v20, %v638_v21 }
 0x159   : > { %v654_v24 = vadd.f32 %v2064_v22, %v646_v23 }
 0x15b   : > { %v655_v25 = vpack.c.bf16 %v654_v24, %v654_v24 }
 0x15d   : > { %2141 = vmatmul.mubr.msk.bf16.vlgmr.msra.gmra.mxu0 %vm623_vm0, %v655_v25  ;;  %2149 = vmatmul.mubr.msk.bf16.vlgmr.msra.gmra.mxu1 %vm623_vm0, %v655_v25 }
 0x15e   : > { %2160 = vmatprep.mubr.msk.bf16.mxu0 %vm2492_vm2, %v2491_v11  ;;  %2172 = vmatprep.mubr.msk.bf16.mxu1 %vm2492_vm2, %v2491_v11 }
 0x15f   : > { %2153 = vmatpush3.bf16.msra.mxu0 %v2297_v27  ;;  %2165 = vmatpush3.bf16.msra.mxu1 %v2298_v28  ;;  %v1381_v27 = vsub.s32 5, %v2786_v10 }
 0x160   : > { %2154 = vmatprep.subr.bf16.mxu0 %v2491_v11  ;;  %2166 = vmatprep.subr.bf16.mxu1 %v2491_v11 }
 0x163   : > { %2155 = vmatpush3.bf16.msra.mxu0 %v2299_v29  ;;  %2167 = vmatpush3.bf16.msra.mxu1 %v2300_v30 }
 0x164   : > { %2156 = vmatprep.subr.bf16.mxu0 %v2491_v11  ;;  %2168 = vmatprep.subr.bf16.mxu1 %v2491_v11 }
 0x167   : > { %2157 = vmatpush3.bf16.msra.mxu0 %v2301_v31  ;;  %2169 = vmatpush3.bf16.msra.mxu1 %v2302_v32  ;;  %v1392_v31 = vsub.s32 6, %v2786_v10  ;;  %v1348_v32 = vsub.s32 2, %v2786_v10 }
 0x168   : > { %2158 = vmatprep.subr.bf16.mxu0 %v2491_v11  ;;  %2170 = vmatprep.subr.bf16.mxu1 %v2491_v11 }
 0x16b   : > { %2159 = vmatpush3.bf16.msra.mxu0 %v2303_v33  ;;  %2171 = vmatpush3.bf16.msra.mxu1 %v2304_v34 }
 0x16c   : > { %2176 = vmatprep.subr.bf16.mxu0 %v2491_v11  ;;  %2188 = vmatprep.subr.bf16.mxu1 %v2491_v11 }
 0x21d   : > { %v709_v35 = vpop.f32.mrf.mxu0  ;;  %v2738_v36 = vpop.f32.mrf.mxu1 }
 0x21e   : > { %775 = vst.msk [vmem:[#allocation4 + $0x3] sm:$0xff] %vm615_vm1, %v709_v35  ;;  %v1403_v35 = vsub.s32 7, %v2786_v10 }
 0x21f   : > { %v2142_v37 = vpop.f32.mrf.mxu0  ;;  %v2150_v38 = vpop.f32.mrf.mxu1 }
 0x221   : > { %v712_v39 = vpop.f32.mrf.mxu0  ;;  %v768_v40 = vpop.f32.mrf.mxu1 }
 0x222   : > { %v1359_v39 = vsub.s32 3, %v2786_v10 }
 0x223   : > { %v2143_v41 = vpop.f32.mrf.mxu0  ;;  %v2151_v42 = vpop.f32.mrf.mxu1 }
 0x225   : > { %v776_v46 = vld [vmem:[#allocation4 + $0x8] sm:$0x7]  ;;  %v786_v47 = vld [vmem:[#allocation4] sm:$0xff] }
 0x226   : > { %v794_v48 = vld [vmem:[#allocation4 + $0x1] sm:$0xff]  ;;  %777 = vst.msk [vmem:[#allocation3] sm:$0x7] %vm618_vm3, %v776_v46  ;;  %v792_v49 = vmul.f32 %v2072_v43, %v786_v47 }
 0x227   : > { %v802_v50 = vld [vmem:[#allocation4 + $0x2] sm:$0xff]  ;;  %v800_v53 = vmul.f32 %v2073_v45, %v794_v48 }
 0x228   : > { %v793_v52 = vadd.f32 %v2071_v44, %v792_v49  ;;  %v810_v54 = vld [vmem:[#allocation4 + $0x3] sm:$0xff]  ;;  %v808_v57 = vmul.f32 %v2074_v51, %v802_v50  ;;  %v2092_v44 = vld [vmem:[%s3104_s12] ss:$0 sm:$0xff] }
 0x229   : > { %v816_v59 = vmul.f32 %v2075_v55, %v810_v54 }
 0x22a   : > { %v801_v56 = vadd.f32 %v800_v53, %v793_v52 }
 0x22c   : > { %v809_v58 = vadd.f32 %v808_v57, %v801_v56 }
 0x22e   : > { %v817_v60 = vadd.f32 %v816_v59, %v809_v58 }
 0x230   : > { %v2076_v61 = vmul.f32 -1.442695, %v817_v60 }
 0x232   : > { %2311 = vpow2.f32 %v2076_v61 }
 0x23f   : > { %v2312_v62 = vpop.eup %2311 }
 0x240   : > { %v821_v63 = vadd.f32 1.0, %v2312_v62 }
 0x242   : > { %2313 = vrcp.f32 %v821_v63 }
 0x24f   : > { %v2314_v0 = vpop.eup %2313 }
 0x250   : > { %v2757_v1 = vmul.f32 %v2314_v0, %v817_v60  ;;  %v2493_v60 = vmov 1966171168  }
 0x251   : > { %v1122_v61 = vunpack.c.l.s4 %v2493_v60 }
 0x252   : > { %v825_v4 = vpack.c.bf16 %v2757_v1, %v2757_v1 }
 0x253   : > { %v1123_v2 = vunpack.c.0.s8 %v1122_v61 }
 0x254   : > { %2161 = vmatmul.mubr.msk.bf16.vlgmr.msra.gmra.mxu0 %vm615_vm1, %v825_v4  ;;  %2173 = vmatmul.mubr.msk.bf16.vlgmr.msra.gmra.mxu1 %vm615_vm1, %v825_v4 }
 0x255   : > { %2177 = vmatpush3.bf16.msra.mxu0 %v2305_v3  ;;  %2184 = vmatprep.mubr.msk.bf16.mxu0 %vm2492_vm2, %v2491_v11 }
 0x256   : > { %2178 = vmatprep.subr.bf16.mxu0 %v2491_v11  ;;  %2189 = vmatpush3.bf16.msra.mxu1 %v1060_v5 }
 0x257   : > { %2190 = vmatprep.mubr.msk.bf16.mxu1 %vm2492_vm2, %v2491_v11 }
 0x259   : > { %2179 = vmatpush3.bf16.msra.mxu0 %v2306_v6 }
 0x25a   : > { %2180 = vmatprep.subr.bf16.mxu0 %v2491_v11 }
 0x25d   : > { %2181 = vmatpush3.bf16.msra.mxu0 %v2307_v7  ;;  %v2829_v7 = vsub.s32 %v1123_v2, %v2786_v10 }
 0x25e   : > { %2182 = vmatprep.subr.bf16.mxu0 %v2491_v11 }
 0x261   : > { %2183 = vmatpush3.bf16.msra.mxu0 %v2308_v8 }
 0x264   : > { %2185 = vmatmul.mubr.msk.bf16.vlgmr.msra.gmra.mxu0 %vm615_vm1, %v825_v4 }
 0x314   : > { %v895_v16 = vpop.f32.mrf.mxu0  ;;  %v967_v17 = vpop.f32.mrf.mxu1 }
 0x315   : > { %v1045_v19 = vpack.c.bf16 %v895_v16, %v895_v16  ;;  %v1338_v20 = vrot.slane %v967_v17, %v1337_v13  ;;  %v1327_v21 = vrot.slane %v967_v17, %v2789_v12  ;;  %v1371_v26 = vrot.slane %v967_v17, %v1370_v18 }
 0x316   : > { %v2162_v22 = vpop.f32.mrf.mxu0  ;;  %v2174_v23 = vpop.f32.mrf.mxu1  ;;  %v1382_v30 = vrot.slane %v967_v17, %v1381_v27  ;;  %v1393_v33 = vrot.slane %v967_v17, %v1392_v31  ;;  %v1349_v34 = vrot.slane %v967_v17, %v1348_v32  ;;  %v1404_v38 = vrot.slane %v967_v17, %v1403_v35 }
 0x317   : > { %1340 = vbcast.lane.b32.xlu0 %v1338_v20, 256  ;;  %1329 = vbcast.lane.b32.xlu1 %v1327_v21, 256  ;;  %v1360_v42 = vrot.slane %v967_v17, %v1359_v39 }
 0x318   : > { %2191 = vmatmul.mubr.msk.bf16.vlgmr.msra.gmra.mxu1 %vm1054_vm5, %v1045_v19  ;;  %v898_v24 = vpop.f32.mrf.mxu0  ;;  %v970_v25 = vpop.f32.mrf.mxu1 }
 0x31a   : > { %v2163_v28 = vpop.f32.mrf.mxu0  ;;  %v2175_v29 = vpop.f32.mrf.mxu1 }
 0x31b   : > { %1377 = vbcast.lane.b32.xlu0 %v1371_v26, 264  ;;  %1333 = vbcast.lane.b32.xlu1 %v1327_v21, 264  ;;  %v1117_v29 = vld [vmem:[%s3105_s13] sm:$0xff] }
 0x31f   : > { %1388 = vbcast.lane.b32.xlu0 %v1382_v30, 264  ;;  %1344 = vbcast.lane.b32.xlu1 %v1338_v20, 264 }
 0x323   : > { %1399 = vbcast.lane.b32.xlu0 %v1393_v33, 264  ;;  %1351 = vbcast.lane.b32.xlu1 %v1349_v34, 256 }
 0x324   : > { %v2808_v37 = vpop.f32.mrf.mxu0 }
 0x326   : > { %v2186_v40 = vpop.f32.mrf.mxu0 }
 0x327   : > { %1410 = vbcast.lane.b32.xlu0 %v1404_v38, 264  ;;  %1355 = vbcast.lane.b32.xlu1 %v1349_v34, 264 }
 0x328   : > { %v1042_v41 = vpop.f32.mrf.mxu0 }
 0x32a   : > { %v2187_v43 = vpop.f32.mrf.mxu0 }
 0x32b   : > { %1362 = vbcast.lane.b32.xlu1 %v1360_v42, 256  ;;  %v1118_v43 = vld [vmem:[%s3105_s13 + $0x8] sm:$0xff] }
 0x32f   : > { %1366 = vbcast.lane.b32.xlu1 %v1360_v42, 264 }
 0x333   : > { %1373 = vbcast.lane.b32.xlu1 %v1371_v26, 256 }
 0x337   : > { %1384 = vbcast.lane.b32.xlu1 %v1382_v30, 256 }
 0x33b   : > { %1395 = vbcast.lane.b32.xlu1 %v1393_v33, 256 }
 0x33f   : > { %1406 = vbcast.lane.b32.xlu1 %v1404_v38, 256 }
 0x389   : > { %v2818_v53 = vpop.permute.xlu1 %1329  ;;  %v2837_v25 = vpop.permute.xlu0 %1340 }
 0x38d   : > { %v2820_v54 = vpop.permute.xlu1 %1333  ;;  %v2865_v60 = vpop.permute.xlu0 %1377 }
 0x391   : > { %v2822_v56 = vpop.permute.xlu1 %1344 }
 0x395   : > { %v2824_v58 = vpop.permute.xlu1 %1351 }
 0x399   : > { %v2826_v62 = vpop.permute.xlu1 %1355 }
 0x39d   : > { %v2831_v8 = vpop.permute.xlu1 %1362 }
 0x3a1   : > { %v2839_v26 = vpop.permute.xlu1 %1366 }
 0x3a5   : > { %v2867_v61 = vpop.permute.xlu1 %1373 }
 0x3d8   : > { %v1096_v45 = vpop.f32.mrf.mxu1 }
 0x3d9   : > { %v1097_v46 = vadd.f32 %v2092_v44, %v1096_v45 }
 0x3da   : > { %v2192_v47 = vpop.f32.mrf.mxu1 }
 0x3db   : > { %v1103_v48 = vand.u32 2147483647, %v1097_v46  ;;  %v1102_v6 = vmax.f32 %v1097_v46, 0.0 }
 0x3dc   : > { %v1099_v49 = vpop.f32.mrf.mxu1 }
 0x3dd   : > { %v1104_v50 = vsub.f32 0.0, %v1103_v48 }
 0x3de   : > { %v2193_v51 = vpop.f32.mrf.mxu1 }
 0x3df   : > { %v1105_v52 = vmul.f32 1.442695, %v1104_v50 }
 0x3e1   : > { %2315 = vpow2.f32 %v1105_v52 }
 0x3ee   : > { %v2316_v55 = vpop.eup %2315 }
 0x3ef   : > { %v1107_v57 = vadd.f32 1.0, %v2316_v55  ;;  %v1110_v59 = vmul.f32 -0.5, %v2316_v55  ;;  %v1113_v0 = vand.u32 2147483647, %v2316_v55 }
 0x3f1   : > { %2317 = vlog2.f32 %v1107_v57  ;;  %v1111_v63 = vadd.f32 1.0, %v1110_v59  ;;  %vm1114_vm6 = vcmp.lt.f32.partialorder %v1113_v0, 0.0004427343 }
 0x3f3   : > { %v1112_v5 = vmul.f32 %v2316_v55, %v1111_v63 }
 0x3fe   : > { %v2318_v3 = vpop.eup %2317 }
 0x3ff   : > { %v1109_v4 = vmul.f32 0.6931472, %v2318_v3 }
 0x401   : > { %v1115_v9 = vsel %vm1114_vm6, %v1112_v5, %v1109_v4 }
 0x402   : > { %v1116_v16 = vadd.f32 %v1115_v9, %v1102_v6 }
 0x404   : > { %v1120_v17 = vcombine.high %v1116_v16, %v1116_v16  ;;  %v1127_v19 = vrot.slane %v1116_v16, %v2829_v7  ;;  %v1273_v20 = vmul.f32 %v1116_v16, %v2757_v1 }
 0x406   : > { %v1134_v21 = vrot.slane %v1120_v17, %v2829_v7  ;;  %v1135_v22 = vcombine.high %v1127_v19, %v1127_v19  ;;  %v1143_v23 = vrot.slane %v1127_v19, %v2829_v7  ;;  %v1275_v24 = vcombine.high %v1273_v20, %v1273_v20 }
 0x407   : > { %v2842_v28 = vrot.slane %v1273_v20, %v2829_v7 }
 0x408   : > { %v1136_v30 = vcombine.high %v1134_v21, %v1134_v21  ;;  %v1150_v33 = vrot.slane %v1134_v21, %v2829_v7  ;;  %v1157_v34 = vrot.slane %v1135_v22, %v2829_v7  ;;  %v1165_v38 = vcombine.high %v1143_v23, %v1143_v23 }
 0x409   : > { %v1172_v40 = vrot.slane %v1143_v23, %v2789_v12  ;;  %v1289_v41 = vrot.slane %v1275_v24, %v2829_v7  ;;  %v1290_v42 = vcombine.high %v2842_v28, %v2842_v28  ;;  %v1298_v51 = vrot.slane %v2842_v28, %v2829_v7 }
 0x40a   : > { %v1164_v44 = vrot.slane %v1136_v30, %v2829_v7  ;;  %v1166_v45 = vcombine.high %v1150_v33, %v1150_v33  ;;  %v1167_v46 = vcombine.high %v1157_v34, %v1157_v34  ;;  %v1176_v47 = vrot.slane %v1157_v34, %v2789_v12 }
 0x40b   : > { %v1180_v48 = vrot.slane %v1165_v38, %v2789_v12  ;;  %v1188_v49 = vrot.slane %v1150_v33, %v2789_v12  ;;  %v1209_v50 = vmul.f32 %v1172_v40, %v1117_v29  ;;  %v1210_v63 = vmul.f32 %v1172_v40, %v1118_v43 }
 0x40c   : > { %v1168_v52 = vcombine.high %v1164_v44, %v1164_v44  ;;  %v1184_v55 = vrot.slane %v1167_v46, %v2789_v12  ;;  %v1192_v57 = vrot.slane %v1164_v44, %v2789_v12  ;;  %v1196_v59 = vrot.slane %v1166_v45, %v2789_v12  ;;  %v1389_v45 = vpop.permute.xlu0 %1388  ;;  %v1385_v46 = vpop.permute.xlu1 %1384 }
 0x40d   : > { %v1211_v0 = vmul.f32 %v1176_v47, %v1117_v29  ;;  %v1212_v2 = vmul.f32 %v1176_v47, %v1118_v43  ;;  %v1213_v3 = vmul.f32 %v1180_v48, %v1117_v29  ;;  %v1214_v5 = vmul.f32 %v1180_v48, %v1118_v43 }
 0x40e   : > { %v1200_v4 = vrot.slane %v1168_v52, %v2789_v12  ;;  %v1215_v6 = vmul.f32 %v1184_v55, %v1117_v29  ;;  %v1216_v9 = vmul.f32 %v1184_v55, %v1118_v43  ;;  %v1217_v16 = vmul.f32 %v1188_v49, %v1117_v29 }
 0x40f   : > { %v1218_v17 = vmul.f32 %v1188_v49, %v1118_v43  ;;  %v1219_v19 = vmul.f32 %v1192_v57, %v1117_v29  ;;  %v1220_v20 = vmul.f32 %v1192_v57, %v1118_v43  ;;  %v1221_v21 = vmul.f32 %v1196_v59, %v1117_v29 }
 0x410   : > { %v1222_v22 = vmul.f32 %v1196_v59, %v1118_v43  ;;  %v1223_v23 = vmul.f32 %v1200_v4, %v1117_v29  ;;  %v1225_v24 = vmul.f32 1.442695, %v1209_v50  ;;  %v1224_v28 = vmul.f32 %v1200_v4, %v1118_v43 }
 0x411   : > { %v1227_v30 = vmul.f32 1.442695, %v1210_v63  ;;  %v1229_v33 = vmul.f32 1.442695, %v1211_v0  ;;  %v1231_v34 = vmul.f32 1.442695, %v1212_v2  ;;  %v1291_v44 = vcombine.high %v1289_v41, %v1289_v41 }
 0x412   : > { %2319 = vpow2.f32 %v1225_v24  ;;  %v1233_v38 = vmul.f32 1.442695, %v1213_v3  ;;  %v1235_v40 = vmul.f32 1.442695, %v1214_v5  ;;  %v1237_v47 = vmul.f32 1.442695, %v1215_v6 }
 0x413   : > { %2321 = vpow2.f32 %v1227_v30  ;;  %v1239_v48 = vmul.f32 1.442695, %v1216_v9  ;;  %v1241_v49 = vmul.f32 1.442695, %v1217_v16  ;;  %v1243_v52 = vmul.f32 1.442695, %v1218_v17  ;;  %v1400_v16 = vpop.permute.xlu0 %1399  ;;  %v1396_v17 = vpop.permute.xlu1 %1395 }
 0x414   : > { %2323 = vpow2.f32 %v1229_v33  ;;  %v1245_v55 = vmul.f32 1.442695, %v1219_v19  ;;  %v1247_v57 = vmul.f32 1.442695, %v1220_v20  ;;  %v1249_v29 = vmul.f32 1.442695, %v1221_v21 }
 0x415   : > { %2325 = vpow2.f32 %v1231_v34  ;;  %v1251_v43 = vmul.f32 1.442695, %v1222_v22  ;;  %v1253_v50 = vmul.f32 1.442695, %v1223_v23  ;;  %v1305_v59 = vrot.slane %v1289_v41, %v2829_v7 }
 0x416   : > { %2327 = vpow2.f32 %v1233_v38  ;;  %v1312_v63 = vrot.slane %v1290_v42, %v2829_v7  ;;  %v1319_v0 = vrot.slane %v1291_v44, %v2829_v7  ;;  %v1255_v2 = vmul.f32 1.442695, %v1224_v28 }
 0x417   : > { %2329 = vpow2.f32 %v1235_v40  ;;  %v1320_v3 = vcombine.high %v1298_v51, %v1298_v51  ;;  %v1415_v4 = vrot.slane %v1298_v51, %v2789_v12  ;;  %v1321_v5 = vcombine.high %v1305_v59, %v1305_v59 }
 0x418   : > { %2331 = vpow2.f32 %v1237_v47  ;;  %v1322_v6 = vcombine.high %v1312_v63, %v1312_v63  ;;  %v1323_v9 = vcombine.high %v1319_v0, %v1319_v0  ;;  %v1419_v19 = vrot.slane %v1312_v63, %v2789_v12 }
 0x419   : > { %2333 = vpow2.f32 %v1239_v48  ;;  %v1423_v41 = vrot.slane %v1320_v3, %v2789_v12  ;;  %v1431_v42 = vrot.slane %v1305_v59, %v2789_v12  ;;  %v1435_v20 = vrot.slane %v1319_v0, %v2789_v12 }
 0x41a   : > { %2335 = vpow2.f32 %v1241_v49  ;;  %v1427_v7 = vrot.slane %v1322_v6, %v2789_v12  ;;  %v1439_v51 = vrot.slane %v1321_v5, %v2789_v12  ;;  %v1443_v21 = vrot.slane %v1323_v9, %v2789_v12 }
 0x41b   : > { %2337 = vpow2.f32 %v1243_v52  ;;  %v1452_v22 = vmul.f32 %v1415_v4, %v2818_v53  ;;  %v1453_v23 = vmul.f32 %v1415_v4, %v2820_v54  ;;  %v1454_v24 = vmul.f32 %v1419_v19, %v2837_v25 }
 0x41c   : > { %2339 = vpow2.f32 %v1245_v55  ;;  %v1455_v28 = vmul.f32 %v1419_v19, %v2822_v56  ;;  %v1456_v30 = vmul.f32 %v1423_v41, %v2824_v58  ;;  %v1457_v33 = vmul.f32 %v1423_v41, %v2826_v62  ;;  %v1411_v58 = vpop.permute.xlu0 %1410  ;;  %v1407_v62 = vpop.permute.xlu1 %1406 }
 0x41d   : > { %2341 = vpow2.f32 %v1247_v57  ;;  %v1458_v34 = vmul.f32 %v1427_v7, %v2831_v8  ;;  %v1459_v38 = vmul.f32 %v1427_v7, %v2839_v26  ;;  %1468 = vst.msk [vmem:[#allocation6] sm:$0xff] %vm615_vm1, %v1452_v22  ;;  %1469 = vst.msk [vmem:[#allocation6 + $0x8] sm:$0xff] %vm615_vm1, %v1453_v23  ;;  %v1460_v53 = vmul.f32 %v1431_v42, %v2867_v61 }
 0x41e   : > { %2343 = vpow2.f32 %v1249_v29  ;;  %v1461_v54 = vmul.f32 %v1431_v42, %v2865_v60  ;;  %v1462_v25 = vmul.f32 %v1435_v20, %v1385_v46  ;;  %1470 = vst.msk [vmem:[#allocation6 + $0x10] sm:$0xff] %vm615_vm1, %v1454_v24  ;;  %1471 = vst.msk [vmem:[#allocation6 + $0x18] sm:$0xff] %vm615_vm1, %v1455_v28  ;;  %v1463_v8 = vmul.f32 %v1435_v20, %v1389_v45 }
 0x41f   : > { %1472 = vst.msk [vmem:[#allocation6 + $0x20] sm:$0xff] %vm615_vm1, %v1456_v30  ;;  %v2320_v56 = vpop.eup %2319  ;;  %2345 = vpow2.f32 %v1251_v43  ;;  %v1464_v26 = vmul.f32 %v1439_v51, %v1396_v17  ;;  %v1465_v40 = vmul.f32 %v1439_v51, %v1400_v16  ;;  %1473 = vst.msk [vmem:[#allocation6 + $0x28] sm:$0xff] %vm615_vm1, %v1457_v33  ;;  %v1466_v61 = vmul.f32 %v1443_v21, %v1407_v62 }
 0x420   : > { %1474 = vst.msk [vmem:[#allocation6 + $0x30] sm:$0xff] %vm615_vm1, %v1458_v34  ;;  %1475 = vst.msk [vmem:[#allocation6 + $0x38] sm:$0xff] %vm615_vm1, %v1459_v38  ;;  %v2322_v60 = vpop.eup %2321  ;;  %2347 = vpow2.f32 %v1253_v50  ;;  %v1467_v44 = vmul.f32 %v1443_v21, %v1411_v58  ;;  %v2483_v3 = vmov %v2687_v14  }
 0x421   : > { %1257 = vst.msk [vmem:[#allocation5] sm:$0xff] %vm615_vm1, %v2320_v56  ;;  %1476 = vst.msk [vmem:[#allocation6 + $0x40] sm:$0xff] %vm615_vm1, %v1460_v53  ;;  %v2324_v45 = vpop.eup %2323  ;;  %2349 = vpow2.f32 %v1255_v2  ;;  %v2479_v2 = vmov %v2689_v15  }
 0x422   : > { %1477 = vst.msk [vmem:[#allocation6 + $0x48] sm:$0xff] %vm615_vm1, %v1461_v54  ;;  %1478 = vst.msk [vmem:[#allocation6 + $0x50] sm:$0xff] %vm615_vm1, %v1462_v25  ;;  %v2326_v46 = vpop.eup %2325 }
 0x423   : > { %1258 = vst.msk [vmem:[#allocation5 + $0x8] sm:$0xff] %vm615_vm1, %v2322_v60  ;;  %1479 = vst.msk [vmem:[#allocation6 + $0x58] sm:$0xff] %vm615_vm1, %v1463_v8  ;;  %v2328_v47 = vpop.eup %2327 }
 0x424   : > { %1480 = vst.msk [vmem:[#allocation6 + $0x60] sm:$0xff] %vm615_vm1, %v1464_v26  ;;  %1481 = vst.msk [vmem:[#allocation6 + $0x68] sm:$0xff] %vm615_vm1, %v1465_v40  ;;  %v2330_v48 = vpop.eup %2329 }
 0x425   : > { %1259 = vst.msk [vmem:[#allocation5 + $0x10] sm:$0xff] %vm615_vm1, %v2324_v45  ;;  %1482 = vst.msk [vmem:[#allocation6 + $0x70] sm:$0xff] %vm615_vm1, %v1466_v61  ;;  %v2332_v49 = vpop.eup %2331 }
 0x426   : > { %1483 = vst.msk [vmem:[#allocation6 + $0x78] sm:$0xff] %vm615_vm1, %v1467_v44  ;;  %1260 = vst.msk [vmem:[#allocation5 + $0x18] sm:$0xff] %vm615_vm1, %v2326_v46  ;;  %v2334_v52 = vpop.eup %2333 }
 0x427   : > { %1261 = vst.msk [vmem:[#allocation5 + $0x20] sm:$0xff] %vm615_vm1, %v2328_v47  ;;  %1262 = vst.msk [vmem:[#allocation5 + $0x28] sm:$0xff] %vm615_vm1, %v2330_v48  ;;  %v2336_v55 = vpop.eup %2335 }
 0x428   : > { %1263 = vst.msk [vmem:[#allocation5 + $0x30] sm:$0xff] %vm615_vm1, %v2332_v49  ;;  %1264 = vst.msk [vmem:[#allocation5 + $0x38] sm:$0xff] %vm615_vm1, %v2334_v52  ;;  %v2338_v57 = vpop.eup %2337 }
 0x429   : > { %1265 = vst.msk [vmem:[#allocation5 + $0x40] sm:$0xff] %vm615_vm1, %v2336_v55  ;;  %v2340_v29 = vpop.eup %2339  ;;  %1266 = vst.msk [vmem:[#allocation5 + $0x48] sm:$0xff] %vm615_vm1, %v2338_v57 }
 0x42a   : > { %v2342_v43 = vpop.eup %2341  ;;  %1267 = vst.msk [vmem:[#allocation5 + $0x50] sm:$0xff] %vm615_vm1, %v2340_v29 }
 0x42b   : > { %v2344_v50 = vpop.eup %2343  ;;  %1268 = vst.msk [vmem:[#allocation5 + $0x58] sm:$0xff] %vm615_vm1, %v2342_v43 }
 0x42c   : > { %v2346_v59 = vpop.eup %2345  ;;  %1269 = vst.msk [vmem:[#allocation5 + $0x60] sm:$0xff] %vm615_vm1, %v2344_v50 }
 0x42d   : > { %v2348_v63 = vpop.eup %2347  ;;  %1270 = vst.msk [vmem:[#allocation5 + $0x68] sm:$0xff] %vm615_vm1, %v2346_v59 }
 0x42e   : > { %v2350_v0 = vpop.eup %2349  ;;  %1271 = vst.msk [vmem:[#allocation5 + $0x70] sm:$0xff] %vm615_vm1, %v2348_v63 }
 0x42f   : > { %1272 = vst.msk [vmem:[#allocation5 + $0x78] sm:$0xff] %vm615_vm1, %v2350_v0 }
 0x430 LB: >> { %s2094_s22 = sshll.u32 %s2489_s21, 4  ;;  %s1491_s21 = sadd.s32 1, %s2489_s21   ;;  %s2489_s21 = sphi %s2487_s21, %s1491_s21   ;;  %v2485_v3 = vphi %v2483_v3, %v2484_v3   ;;  %v2481_v2 = vphi %v2479_v2, %v2480_v2  }
 0x431   : >> { %s1495_s30 = scalar_lea.vmem [#allocation5], %s2094_s22  ;;  %s1500_s20 = scalar_lea.vmem [#allocation6], %s2094_s22 }
 0x432   : >> { %v1501_v5 = vld [vmem:[%s1500_s20] sm:$0xff]  ;;  %v1502_v17 = vld [vmem:[%s1500_s20 + $0x8] sm:$0xff]  ;;  %p1488_p12 = scmp.ge.s32.totalorder %s1491_s21, 8  }
 0x433   : > { %v1534_v14 = vrot.slane (%p1488_p12), %v2808_v37, %v1348_v32  ;;  %v1523_v15 = vrot.slane (%p1488_p12), %v2808_v37, %v1337_v13  ;;  %2194 = vmatprep.subr.bf16.mxu1 (%p1488_p12), %v2491_v11  ;;  %2202 = vmatprep.mubr.msk.bf16.mxu1 (%p1488_p12), %vm2492_vm2, %v2491_v11  ;;  %v1512_v32 = vrot.slane (%p1488_p12), %v2808_v37, %v2789_v12  ;;  %v2353_v10 = vld [vmem:[%s3107_s15 + $0x8] sm:$0xff] (%p1488_p12)   ;;  %vm1797_vm7 = vcmask (%p1488_p12), 1041409   ;;  %s3118_s0 = sshll.u32 (%p1488_p12), %s2469_s27, 7  ;;  %s1920_s28 = sshll.u32 (%p1488_p12), %s2656_s25, 4  ;;  %s1921_s28 = int_to_ptr.vmem [resolvable:$true] %s1920_s28 }
 0x434   : > { %v1545_v13 = vrot.slane (%p1488_p12), %v2808_v37, %v1359_v39  ;;  %v1556_v42 = vrot.slane (%p1488_p12), %v2808_v37, %v1370_v18  ;;  %v1567_v7 = vrot.slane (%p1488_p12), %v2808_v37, %v1381_v27  ;;  %v1578_v12 = vrot.slane (%p1488_p12), %v2808_v37, %v1392_v31  ;;  %v2351_v18 = vld [vmem:[%s3107_s15 + $0x18] sm:$0xff] (%p1488_p12)   ;;  %v2352_v27 = vld [vmem:[%s3107_s15 + $0x10] sm:$0xff] (%p1488_p12)   ;;  %v2354_v31 = vld [vmem:[%s3107_s15] sm:$0xff] (%p1488_p12)   ;;  %s1918_s26 = scalar_lea.hbm (%p1488_p12), %s3109_s17, %s3118_s0  ;;  %s1892_s29 = scalar_lea.sflag (%p1488_p12), [#allocation10], %s2643_s23 }
 0x435   : > { %1536 = vbcast.lane.b32.xlu1 (%p1488_p12), %v1534_v14, 256  ;;  %1525 = vbcast.lane.b32.xlu0 (%p1488_p12), %v1523_v15, 256  ;;  %v1589_v39 = vrot.slane (%p1488_p12), %v2808_v37, %v1403_v35  ;;  %v2096_v35 = vmul.f32 (%p1488_p12), -1.442695, %v2738_v36  ;;  %vm1800_vm8 = vcmask (%p1488_p12), 1042434   ;;  %vm1803_vm9 = vcmask (%p1488_p12), 1043459  }
 0x436   : >> { %v1496_v4 = vld [vmem:[%s1495_s30] sm:$0xff]  ;;  %v1497_v6 = vld [vmem:[%s1495_s30 + $0x8] sm:$0xff]  ;;  %2195 = vmatpush3.bf16.msra.mxu1 (%p1488_p12), %v2351_v18  ;;  %vm1806_vm10 = vcmask (%p1488_p12), 1044484   ;;  %vm1809_vm11 = vcmask (%p1488_p12), 1045509   ;;  %vm1812_vm12 = vcmask (%p1488_p12), 1046534   ;;  %vm1815_vm13 = vcmask (%p1488_p12), 1047559  }
 0x437   : >> { %v1498_v9 = vmul.f32 %v2485_v3, %v1496_v4  ;;  %v1499_v16 = vmul.f32 %v2481_v2, %v1497_v6  ;;  %1490 = sbr.rel (!%p1488_p12) target bundleno = 1072 (0x430), region = 152  ;;  %2196 = vmatprep.subr.bf16.mxu1 (%p1488_p12), %v2491_v11  ;;  %2355 = vpow2.f32 (%p1488_p12), %v2096_v35  ;;  %s2359_s21 = scalar_lea.vmem (%p1488_p12), %s1921_s28, 128 }
 0x438   : > { %p2360_p13 = scmp.ne.s32.totalorder (%p1488_p12), %s1921_s28, %s2359_s21  ;;  %s2494_s22 = smov (%p1488_p12), [#allocation9]  }
 0x439   : >> { %v1503_v19 = vadd.f32 %v1501_v5, %v1498_v9   ;;  %v1504_v41 = vadd.f32 %v1502_v17, %v1499_v16   ;;  %1540 = vbcast.lane.b32.xlu1 (%p1488_p12), %v1534_v14, 264  ;;  %1529 = vbcast.lane.b32.xlu0 (%p1488_p12), %v1523_v15, 264  ;;  %s2363_s30 = sshll.u32 (%p1488_p12), %s2494_s22, 4  ;;  %s2364_s30 = int_to_ptr.vmem [resolvable:$false] %s2363_s30 }
 0x43a   : > { %2197 = vmatpush3.bf16.msra.mxu1 (%p1488_p12), %v2352_v27  ;;  %p2361_p0 = pnand (%p1488_p12), %p2360_p13, %p2626_p4  ;;  %p2366_p2 = scmp.lt.s32.totalorder (%p1488_p12), %s1921_s28, %s2364_s30 }
 0x43b   : >> { %1505 = vst.msk [vmem:[%s1500_s20] sm:$0xff] %vm615_vm1, %v1503_v19  ;;  %1506 = vst.msk [vmem:[%s1500_s20 + $0x8] sm:$0xff] %vm615_vm1, %v1504_v41  ;;  %v2480_v2 = vmov %v1504_v41   ;;  %v2484_v3 = vmov %v1503_v19   ;;  %2198 = vmatprep.subr.bf16.mxu1 (%p1488_p12), %v2491_v11  ;;  %s2365_s20 = scalar_lea.vmem (%p1488_p12), %s2364_s30, 256 }
 0x43c   : > { %1507 = vst.msk [vmem:[#allocation2] sm:$0xff] %vm615_vm1, %v1503_v19  ;;  %1508 = vst.msk [vmem:[#allocation2 + $0x8] sm:$0xff] %vm615_vm1, %v1504_v41  ;;  %p2362_p1 = pneg %p2361_p0  ;;  %p2367_p3 = scmp.lt.s32.totalorder %s2365_s20, %s2359_s21 }
 0x43d   : > { %1518 = vbcast.lane.b32.xlu1 %v1512_v32, 264  ;;  %1514 = vbcast.lane.b32.xlu0 %v1512_v32, 256 }
 0x43e   : > { %2199 = vmatpush3.bf16.msra.mxu1 %v2353_v10  ;;  %p2368_p5 = por %p2367_p3, %p2366_p2 }
 0x43f   : > { %2200 = vmatprep.subr.bf16.mxu1 %v2491_v11 }
 0x440   : > { %p2369_p6 = pnand %p2368_p5, %p2362_p1 }
 0x441   : > { %1551 = vbcast.lane.b32.xlu1 %v1545_v13, 264  ;;  %1547 = vbcast.lane.b32.xlu0 %v1545_v13, 256 }
 0x442   : > { %2201 = vmatpush3.bf16.msra.mxu1 %v2354_v31  ;;  %v1601_v37 = vld [vmem:[#allocation6 + $0x20] sm:$0xff]  ;;  %v1599_v51 = vld [vmem:[#allocation6 + $0x10] sm:$0xff]  ;;  %v1602_v22 = vld [vmem:[#allocation6 + $0x28] sm:$0xff] }
 0x443   : > { %v1600_v23 = vld [vmem:[#allocation6 + $0x18] sm:$0xff]  ;;  %v1598_v54 = vld [vmem:[#allocation6 + $0x8] sm:$0xff]  ;;  %v1597_v25 = vld [vmem:[#allocation6] sm:$0xff] }
 0x444   : > { %v2356_v34 = vpop.eup %2355  ;;  %v1604_v47 = vld [vmem:[#allocation6 + $0x38] sm:$0xff]  ;;  %v1603_v48 = vld [vmem:[#allocation6 + $0x30] sm:$0xff]  ;;  %v1606_v2 = vld [vmem:[#allocation6 + $0x48] sm:$0xff] }
 0x445   : > { %1562 = vbcast.lane.b32.xlu1 %v1556_v42, 264  ;;  %1558 = vbcast.lane.b32.xlu0 %v1556_v42, 256  ;;  %v1736_v8 = vadd.f32 1.0, %v2356_v34  ;;  %v1605_v3 = vld [vmem:[#allocation6 + $0x40] sm:$0xff]  ;;  %v1608_v42 = vld [vmem:[#allocation6 + $0x58] sm:$0xff] }
 0x447   : > { %2357 = vrcp.f32 %v1736_v8 }
 0x449   : > { %1573 = vbcast.lane.b32.xlu1 %v1567_v7, 264  ;;  %1569 = vbcast.lane.b32.xlu0 %v1567_v7, 256  ;;  %v1607_v7 = vld [vmem:[#allocation6 + $0x50] sm:$0xff] }
 0x44d   : > { %1584 = vbcast.lane.b32.xlu1 %v1578_v12, 264  ;;  %1580 = vbcast.lane.b32.xlu0 %v1578_v12, 256  ;;  %v2095_v12 = vld [vmem:[%s3106_s14] ss:$0 sm:$0xff] }
 0x451   : > { %1595 = vbcast.lane.b32.xlu1 %v1589_v39, 264  ;;  %1591 = vbcast.lane.b32.xlu0 %v1589_v39, 256 }
 0x4a7   : > { %v1537_v20 = vpop.permute.xlu1 %1536  ;;  %v1526_v21 = vpop.permute.xlu0 %1525 }
 0x4a8   : > { %v1617_v24 = vmul.f32 %v1601_v37, %v1537_v20  ;;  %v1615_v28 = vmul.f32 %v1599_v51, %v1526_v21 }
 0x4aa   : > { %v1647_v11 = vsel %vm615_vm1, %v1617_v24, 0.0  ;;  %v1638_v56 = vsel %vm615_vm1, %v1615_v28, 0.0  ;;  %v1610_v28 = vld [vmem:[#allocation6 + $0x68] sm:$0xff] }
 0x4ab   : > { %v1541_v30 = vpop.permute.xlu1 %1540  ;;  %v1530_v33 = vpop.permute.xlu0 %1529 }
 0x4ac   : > { %v1618_v38 = vmul.f32 %v1602_v22, %v1541_v30  ;;  %v1616_v53 = vmul.f32 %v1600_v23, %v1530_v33  ;;  %v2989_v22 = vmul.f32 %v2095_v12, %v2757_v1  ;;  %v1609_v30 = vld [vmem:[#allocation6 + $0x60] sm:$0xff] }
 0x4ae   : > { %v1648_v58 = vsel %vm615_vm1, %v1618_v38, 0.0  ;;  %v1639_v62 = vsel %vm615_vm1, %v1616_v53, 0.0 }
 0x4af   : > { %v1649_v26 = vadd.f32 %v1648_v58, %v1647_v11  ;;  %v1640_v40 = vadd.f32 %v1639_v62, %v1638_v56  ;;  %v1519_v60 = vpop.permute.xlu1 %1518  ;;  %v1515_v61 = vpop.permute.xlu0 %1514 }
 0x4b0   : > { %v1614_v44 = vmul.f32 %v1598_v54, %v1519_v60  ;;  %v1613_v45 = vmul.f32 %v1597_v25, %v1515_v61  ;;  %v2358_v58 = vpop.eup %2357 }
 0x4b1   : > { %v1641_v46 = vrot.slane %v1640_v40, 4  ;;  %v1650_v55 = vrot.slane %v1649_v26, 4 }
 0x4b2   : > { %v1630_v49 = vsel %vm615_vm1, %v1614_v44, 0.0  ;;  %v1629_v52 = vsel %vm615_vm1, %v1613_v45, 0.0  ;;  %v1612_v44 = vld [vmem:[#allocation6 + $0x78] sm:$0xff] }
 0x4b3   : > { %v1642_v57 = vadd.f32 %v1641_v46, %v1640_v40  ;;  %v1631_v29 = vadd.f32 %v1630_v49, %v1629_v52  ;;  %v1552_v43 = vpop.permute.xlu1 %1551  ;;  %v1548_v50 = vpop.permute.xlu0 %1547  ;;  %v1651_v6 = vadd.f32 %v1650_v55, %v1649_v26  ;;  %v1711_v40 = vrot.slane %v2989_v22, 2 }
 0x4b4   : > { %v1620_v59 = vmul.f32 %v1604_v47, %v1552_v43  ;;  %v1619_v63 = vmul.f32 %v1603_v48, %v1548_v50  ;;  %v2997_v49 = vmul.f32 %v2358_v58, %v2738_v36  ;;  %v1710_v55 = vrot.slane %v2989_v22, 1 }
 0x4b5   : > { %v1632_v0 = vrot.slane %v1631_v29, 4  ;;  %v1643_v9 = vrot.slane %v1642_v57, 2  ;;  %v1652_v27 = vrot.slane %v1651_v6, 2 }
 0x4b6   : > { %v1657_v4 = vsel %vm615_vm1, %v1620_v59, 0.0  ;;  %v1656_v5 = vsel %vm615_vm1, %v1619_v63, 0.0  ;;  %v1742_v12 = vrot.slane %v2997_v49, 2 }
 0x4b7   : > { %v1633_v16 = vadd.f32 %v1632_v0, %v1631_v29  ;;  %v1658_v17 = vadd.f32 %v1657_v4, %v1656_v5  ;;  %v1563_v19 = vpop.permute.xlu1 %1562  ;;  %v1559_v41 = vpop.permute.xlu0 %1558  ;;  %v1644_v10 = vadd.f32 %v1643_v9, %v1642_v57  ;;  %v1653_v53 = vadd.f32 %v1652_v27, %v1651_v6  ;;  %v1611_v0 = vld [vmem:[#allocation6 + $0x70] sm:$0xff] }
 0x4b8   : > { %v1622_v14 = vmul.f32 %v1606_v2, %v1563_v19  ;;  %v1621_v15 = vmul.f32 %v1605_v3, %v1559_v41  ;;  %v1712_v4 = vrot.slane %v2989_v22, 3  ;;  %v1713_v5 = vrot.slane %v2989_v22, 4 }
 0x4b9   : > { %v1634_v32 = vrot.slane %v1633_v16, 2  ;;  %v1659_v13 = vrot.slane %v1658_v17, 4  ;;  %v1645_v54 = vrot.slane %v1644_v10, 1  ;;  %v1654_v52 = vrot.slane %v1653_v53, 1 }
 0x4ba   : > { %v1666_v39 = vsel %vm615_vm1, %v1622_v14, 0.0  ;;  %v1665_v18 = vsel %vm615_vm1, %v1621_v15, 0.0  ;;  %v1714_v6 = vrot.slane %v2989_v22, 5  ;;  %v1741_v41 = vrot.slane %v2997_v49, 1 }
 0x4bb   : > { %v1660_v31 = vadd.f32 %v1659_v13, %v1658_v17  ;;  %v1574_v35 = vpop.permute.xlu1 %1573  ;;  %v1570_v37 = vpop.permute.xlu0 %1569  ;;  %v1667_v20 = vadd.f32 %v1666_v39, %v1665_v18  ;;  %v1635_v23 = vadd.f32 %v1634_v32, %v1633_v16  ;;  %v1646_v57 = vadd.f32 %v1645_v54, %v1644_v10 }
 0x4bc   : > { %v1624_v51 = vmul.f32 %v1608_v42, %v1574_v35  ;;  %v1623_v21 = vmul.f32 %v1607_v7, %v1570_v37  ;;  %v1655_v19 = vadd.f32 %v1654_v52, %v1653_v53  ;;  %v1743_v18 = vrot.slane %v2997_v49, 3 }
 0x4bd   : > { %v1661_v24 = vrot.slane %v1660_v31, 2  ;;  %v1668_v33 = vrot.slane %v1667_v20, 4  ;;  %v1636_v60 = vrot.slane %v1635_v23, 1  ;;  %v1726_v32 = vadd.f32 %v1710_v55, %v1646_v57 }
 0x4be   : > { %v1675_v34 = vsel %vm615_vm1, %v1624_v51, 0.0  ;;  %v1674_v38 = vsel %vm615_vm1, %v1623_v21, 0.0  ;;  %v1744_v51 = vrot.slane %v2997_v49, 4 }
 0x4bf   : > { %v1662_v25 = vadd.f32 %v1661_v24, %v1660_v31  ;;  %v1585_v11 = vpop.permute.xlu1 %1584  ;;  %v1581_v56 = vpop.permute.xlu0 %1580  ;;  %v1669_v62 = vadd.f32 %v1668_v33, %v1667_v20  ;;  %v1676_v8 = vadd.f32 %v1675_v34, %v1674_v38  ;;  %v1637_v3 = vadd.f32 %v1636_v60, %v1635_v23 }
 0x4c0   : > { %v1626_v26 = vmul.f32 %v1610_v28, %v1585_v11  ;;  %v1625_v1 = vmul.f32 %v1609_v30, %v1581_v56  ;;  %v1727_v20 = vadd.f32 %v1711_v40, %v1655_v19  ;;  %v1745_v23 = vrot.slane %v2997_v49, 5 }
 0x4c1   : > { %v1663_v61 = vrot.slane %v1662_v25, 1  ;;  %v1670_v45 = vrot.slane %v1669_v62, 2  ;;  %v1677_v46 = vrot.slane %v1676_v8, 4  ;;  %v1725_v39 = vadd.f32 %v2989_v22, %v1637_v3 }
 0x4c2   : > { %v1684_v47 = vsel %vm615_vm1, %v1626_v26, 0.0  ;;  %v1683_v48 = vsel %vm615_vm1, %v1625_v1, 0.0  ;;  %v1757_v24 = vmul.f32 %v1741_v41, %v1726_v32  ;;  %v1715_v38 = vrot.slane %v2989_v22, 6 }
 0x4c3   : > { %v1596_v29 = vpop.permute.xlu1 %1595  ;;  %v1671_v43 = vadd.f32 %v1670_v45, %v1669_v62  ;;  %v1678_v50 = vadd.f32 %v1677_v46, %v1676_v8  ;;  %v1685_v59 = vadd.f32 %v1684_v47, %v1683_v48  ;;  %v1592_v2 = vpop.permute.xlu0 %1591  ;;  %v1664_v36 = vadd.f32 %v1663_v61, %v1662_v25 }
 0x4c4   : > { %v1628_v63 = vmul.f32 %v1612_v44, %v1596_v29  ;;  %v1627_v15 = vmul.f32 %v1611_v0, %v1592_v2  ;;  %v1756_v34 = vmul.f32 %v2997_v49, %v1725_v39  ;;  %v1758_v56 = vmul.f32 %v1742_v12, %v1727_v20 }
 0x4c5   : > { %v1672_v9 = vrot.slane %v1671_v43, 1  ;;  %v1679_v16 = vrot.slane %v1678_v50, 2  ;;  %v1686_v17 = vrot.slane %v1685_v59, 4  ;;  %v1728_v10 = vadd.f32 %v1712_v4, %v1664_v36 }
 0x4c6   : > { %v1693_v14 = vsel %vm615_vm1, %v1628_v63, 0.0  ;;  %v1692_v27 = vsel %vm615_vm1, %v1627_v15, 0.0  ;;  %v1746_v62 = vrot.slane %v2997_v49, 6  ;;  %v1765_v8 = vpack.c.bf16 %v1757_v24, %v1757_v24 }
 0x4c7   : > { %v1673_v13 = vadd.f32 %v1672_v9, %v1671_v43  ;;  %v1680_v42 = vadd.f32 %v1679_v16, %v1678_v50  ;;  %v1687_v7 = vadd.f32 %v1686_v17, %v1685_v59  ;;  %v1694_v37 = vadd.f32 %v1693_v14, %v1692_v27 }
 0x4c8   : > { %v1759_v53 = vmul.f32 %v1743_v18, %v1728_v10  ;;  %v1764_v60 = vpack.c.bf16 %v1756_v34, %v1756_v34  ;;  %v1766_v46 = vpack.c.bf16 %v1758_v56, %v1758_v56  ;;  %v1716_v48 = vrot.slane %v2989_v22, 7 }
 0x4c9   : > { %v1681_v31 = vrot.slane %v1680_v42, 1  ;;  %v1688_v35 = vrot.slane %v1687_v7, 2  ;;  %v1729_v21 = vadd.f32 %v1713_v5, %v1673_v13  ;;  %v1695_v33 = vrot.slane %v1694_v37, 4 }
 0x4ca   : > { %v1767_v61 = vpack.c.bf16 %v1759_v53, %v1759_v53  ;;  %v1789_v52 = vunpack.c.l.b16 %v1765_v8  ;;  %v1747_v43 = vrot.slane %v2997_v49, 7  ;;  %v1788_v50 = vunpack.c.l.b16 %v1764_v60 }
 0x4cb   : > { %v1682_v28 = vadd.f32 %v1681_v31, %v1680_v42  ;;  %v1689_v30 = vadd.f32 %v1688_v35, %v1687_v7  ;;  %v1696_v11 = vadd.f32 %v1695_v33, %v1694_v37  ;;  %v1760_v58 = vmul.f32 %v1744_v51, %v1729_v21 }
 0x4cc   : > { %v1791_v59 = vunpack.c.l.b16 %v1767_v61  ;;  %v1790_v2 = vunpack.c.l.b16 %v1766_v46  ;;  %v1796_v4 = vrot.slane %v1789_v52, 7 }
 0x4cd   : > { %v1730_v54 = vadd.f32 %v1714_v6, %v1682_v28  ;;  %v1690_v25 = vrot.slane %v1689_v30, 1  ;;  %v1697_v40 = vrot.slane %v1696_v11, 2  ;;  %v1768_v47 = vpack.c.bf16 %v1760_v58, %v1760_v58 }
 0x4ce   : > { %v1798_v9 = vsel %vm1797_vm7, %v1796_v4, %v1788_v50  ;;  %v1802_v16 = vrot.slane %v1791_v59, 5  ;;  %v1799_v17 = vrot.slane %v1790_v2, 6 }
 0x4cf   : > { %v1761_v26 = vmul.f32 %v1745_v23, %v1730_v54  ;;  %v1691_v1 = vadd.f32 %v1690_v25, %v1689_v30  ;;  %v1698_v45 = vadd.f32 %v1697_v40, %v1696_v11  ;;  %v1792_v3 = vunpack.c.l.b16 %v1768_v47 }
 0x4d0   : > { %v1801_v14 = vsel %vm1800_vm8, %v1799_v17, %v1798_v9 }
 0x4d1   : > { %v1731_v44 = vadd.f32 %v1715_v38, %v1691_v1  ;;  %v1769_v55 = vpack.c.bf16 %v1761_v26, %v1761_v26  ;;  %v1699_v29 = vrot.slane %v1698_v45, 1  ;;  %v1805_v19 = vrot.slane %v1792_v3, 4 }
 0x4d2   : > { %v1804_v13 = vsel %vm1803_vm9, %v1802_v16, %v1801_v14 }
 0x4d3   : > { %v1762_v57 = vmul.f32 %v1746_v62, %v1731_v44  ;;  %v1700_v63 = vadd.f32 %v1699_v29, %v1698_v45  ;;  %v1793_v5 = vunpack.c.l.b16 %v1769_v55  ;;  %v1807_v42 = vsel %vm1806_vm10, %v1805_v19, %v1804_v13 }
 0x4d5   : > { %v1770_v0 = vpack.c.bf16 %v1762_v57, %v1762_v57  ;;  %v1732_v6 = vadd.f32 %v1716_v48, %v1700_v63  ;;  %v1808_v49 = vrot.slane %v1793_v5, 3 }
 0x4d7   : > { %v1794_v36 = vunpack.c.l.b16 %v1770_v0  ;;  %v1763_v22 = vmul.f32 %v1747_v43, %v1732_v6  ;;  %v1810_v7 = vsel %vm1809_vm11, %v1808_v49, %v1807_v42 }
 0x4d9   : > { %v1771_v41 = vpack.c.bf16 %v1763_v22, %v1763_v22  ;;  %v1811_v15 = vrot.slane %v1794_v36, 2 }
 0x4db   : > { %v1795_v32 = vunpack.c.l.b16 %v1771_v41  ;;  %v1813_v39 = vsel %vm1812_vm12, %v1811_v15, %v1810_v7 }
 0x4dd   : > { %v1814_v12 = vrot.slane %v1795_v32, 1 }
 0x4df   : > { %v1816_v18 = vsel %vm1815_vm13, %v1814_v12, %v1813_v39 }
 0x4e0   : > { %v1817_v27 = vpack.c.b16 %v1816_v18, %v1816_v18 }
 0x4e2   : > { %2203 = vmatmul.mubr.msk.bf16.vlgmr.msra.gmra.mxu1 %vm615_vm1, %v1817_v27 }
 0x4e3   : > { %2372 = shalt.err (!%p2369_p6)
}
 0x4e4   : > { %s2373_s2 = scalar_lea.hbm %s1918_s26, 128  ;;  %s2377_s24 = scalar_lea.hbm %s3109_s17, 256 }
 0x4e5   : > { %p2374_p7 = scmp.ne.s32.totalorder %s1918_s26, %s2373_s2  ;;  %p2378_p11 = scmp.lt.s32.totalorder %s1918_s26, %s3109_s17 }
 0x4e6   : > { %p2379_p12 = scmp.lt.s32.totalorder %s2377_s24, %s2373_s2 }
 0x4e7   : > { %p2375_p9 = pnand %p2374_p7, %p2626_p4 }
 0x4e8   : > { %p2380_p13 = por %p2379_p12, %p2378_p11 }
 0x4e9   : > { %p2376_p10 = pneg %p2375_p9 }
 0x4eb   : > { %p2381_p0 = pnand %p2380_p13, %p2376_p10 }
 0x4ed   : > { %2384 = shalt.err (!%p2381_p0)
}
 0x4ee   : > { %2207 = dma.vmem_to_hbm [thread:$0]  (%p2626_p4), %s1921_s28, 128, %s1918_s26, %s1892_s29  }
 0x4ef   : > { %s1906_s21 = sshll.u32 %s2925_s18, 4  ;;  %s3137_s22 = sshll.u32 %s2469_s27, 7  ;;  %s3045_s21 = int_to_ptr.vmem [resolvable:$true] %s1906_s21 }
 0x4f0   : > { %s3043_s25 = scalar_lea.hbm %s3108_s16, %s3137_s22  ;;  %s1887_s2 = scalar_lea.sflag [#allocation8], %s2643_s23 }
 0x4f1   : > { %s2385_s3 = scalar_lea.vmem %s3045_s21, 128  ;;  %s2495_s27 = smov [#allocation7]  }
 0x4f2   : > { %p2386_p1 = scmp.ne.s32.totalorder %s3045_s21, %s2385_s3  ;;  %s2389_s0 = sshll.u32 %s2495_s27, 4  ;;  %s2390_s0 = int_to_ptr.vmem [resolvable:$false] %s2389_s0 }
 0x4f3   : > { %s2391_s26 = scalar_lea.vmem %s2390_s0, 256  ;;  %p2392_p5 = scmp.lt.s32.totalorder %s3045_s21, %s2390_s0 }
 0x4f4   : > { %p2387_p2 = pnand %p2386_p1, %p2626_p4  ;;  %p2393_p6 = scmp.lt.s32.totalorder %s2391_s26, %s2385_s3 }
 0x4f6   : > { %p2388_p3 = pneg %p2387_p2  ;;  %p2394_p7 = por %p2393_p6, %p2392_p5 }
 0x4f8   : > { %p2395_p9 = pnand %p2394_p7, %p2388_p3 }
 0x5a2   : > { %v1879_v10 = vpop.f32.mrf.mxu1 }
 0x5a3   : > { %1885 = vst.msk [vmem:[%s2925_s18] sm:$0xff] %vm623_vm0, %v1879_v10 }
 0x5a4   : > { %v2204_v31 = vpop.f32.mrf.mxu1 }
 0x5a5   : > { %2398 = shalt.err (!%p2395_p9)
}
 0x5a6   : > { %s2399_s18 = scalar_lea.hbm %s3043_s25, 128  ;;  %s2403_s29 = scalar_lea.hbm %s3108_s16, 256 }
 0x5a7   : > { %p2400_p10 = scmp.ne.s32.totalorder %s3043_s25, %s2399_s18  ;;  %p2404_p13 = scmp.lt.s32.totalorder %s3043_s25, %s3108_s16 }
 0x5a8   : > { %p2405_p0 = scmp.lt.s32.totalorder %s2403_s29, %s2399_s18 }
 0x5a9   : > { %p2401_p11 = pnand %p2400_p10, %p2626_p4 }
 0x5aa   : > { %p2406_p1 = por %p2405_p0, %p2404_p13 }
 0x5ab   : > { %p2402_p12 = pneg %p2401_p11 }
 0x5ad   : > { %p2407_p2 = pnand %p2406_p1, %p2402_p12 }
 0x5af   : > { %2410 = shalt.err (!%p2407_p2)
}
 0x5b0   : > { %2206 = dma.vmem_to_hbm [thread:$0]  (%p2626_p4), %s3045_s21, 128, %s3043_s25, %s1887_s2   ;;  %v1882_v35 = vpop.f32.mrf.mxu1 }
 0x5b2   : > { %v2205_v37 = vpop.f32.mrf.mxu1 }
 0x5b3 PF: > { %s3138_s22 = sld [smem:[#allocation17_spill]] }
 0x5b4   : > { %s3139_s30 = sld [smem:[#allocation13_spill]] }
 0x5b9   : > { %p2217_p3 = scmp.ge.s32.totalorder %s3138_s22, 2 }
 0x5ba   : > { %s1932_s3 = sand.u32 1, %s3139_s30  }
 0x5bb   : > { %p2211_p5 = pnand %p2217_p3, %p2633_p8  ;;  %s1933_s27 = scalar_lea.sflag [#allocation8], %s1932_s3 }
 0x5bd   : > { %p2212_p6 = pneg %p2211_p5 }
 0x5bf   : > { %2448 = dma.done.wait (%p2212_p6), %s1933_s27, 128  }
 0x5c0   : > { %2450 = vsyncadd (%p2212_p6), %s1933_s27, 4294967168  ;;  %s1942_s0 = scalar_lea.sflag [#allocation10], %s1932_s3 }
 0x5c1   : > { %2452 = dma.done.wait (%p2212_p6), %s1942_s0, 128  }
 0x5c2   : > { %2454 = vsyncadd (%p2212_p6), %s1942_s0, 4294967168  ;;  %s34_s29 = sadd.s32 1, %s3138_s22   ;;  %s3141_s24 = sld [smem:[#allocation14_spill]] }
 0x5c3   : > { %p31_p4 = scmp.ge.s32.totalorder %s34_s29, 4   ;;  %s3142_s25 = sld [smem:[#allocation15_spill]] }
 0x5c4   : > { %s3143_s26 = sld [smem:[#allocation20_spill]] }
 0x5c5   : > { %s3144_s27 = sld [smem:[#allocation16_spill]]  ;;  %33 = sbr.rel (!%p31_p4) target bundleno = 11 (0xb), region = 163 }
 0x5c6   : > { %s3145_s28 = sld [smem:[#allocation18_spill]] }
 0x5ca   :  { %1947 = vsyncpa [#allocation8], 1 }
 0x5cb   :  { %1949 = vsyncpa [#allocation8 + $0x1], 1 }
 0x5cc   :  { %1950 = vsyncpa [#allocation10], 1 }
 0x5cd   :  { %1952 = vsyncpa [#allocation10 + $0x1], 1 }

</bundles_post_ra>
